<compile_context>
chip_gen: v7x
topology: tpu7x:2x2x1
jax: 0.10.0
libtpu: 0.0.40
codegen_flags: <defaults>
</compile_context>

<pallas_src>
import functools

import jax
import jax.numpy as jnp
from jax.experimental import pallas as pl
from jax.experimental.pallas import tpu as pltpu


def _fused_conv2d_kernel(x_ref, w_ref, b_ref, o_ref, *, K, stride, toh, OW):
    # x_ref: (Hp, Wp, IC)   bf16 -- full padded image for this batch index
    #                              (stays resident in VMEM across oh-tiles of n)
    # w_ref: (K*K, IC, OCp) bf16 -- resident weight, kk = kh*K + kw
    # b_ref: (1, OCp)       f32
    # o_ref: (toh*OW, OCp)  f32  -- rows are (oh, ow) row-major within the tile
    IC = x_ref.shape[-1]
    OCp = w_ref.shape[-1]
    oh0 = pl.program_id(1) * (toh * stride)  # first input row of this tile (before +kh)

    acc = jnp.zeros((toh * OW, OCp), dtype=jnp.float32)
    for kh in range(K):                       # fused im2col: K*K shifted windows,
        for kw in range(K):                   # accumulated on the MXU in f32.
            if stride == 1:
                xs = x_ref[pl.ds(oh0 + kh, toh), pl.ds(kw, OW), :]
            else:
                xs = x_ref[pl.ds(oh0 + kh, toh, stride=stride),
                           pl.ds(kw, OW, stride=stride), :]
            lhs = xs.reshape(toh * OW, IC)    # VMEM-only "patch" tile
            acc = acc + jnp.dot(lhs, w_ref[kh * K + kw],
                                preferred_element_type=jnp.float32)
    o_ref[...] = (acc + b_ref[...]).astype(o_ref.dtype)


def _pick_row_tile(OH, OW, target_rows=512):
    """Largest divisor of OH with toh*OW <= target rows and an 8-aligned row
    count (lane/sublane friendly); fall back to the full height."""
    cands = [d for d in range(1, OH + 1)
             if OH % d == 0 and d * OW <= target_rows and (d * OW) % 8 == 0]
    return max(cands) if cands else OH


def prepare_sparse_conv2d_params(w_dense_masked, bias):
    """One-time ("model load") prep, hoisted out of the per-call path:
    (OC, IC, K, K) -> (K*K, IC, OCp) bf16 with OC padded to a multiple of 128;
    bias -> (1, OCp) f32.  (If the sparsity were structured — whole (ic,kh,kw)
    columns or whole OCs zero — pruning those slices here would shrink the
    contraction; unstructured zeros are intentionally kept dense.)"""
    OC, IC, K, _ = w_dense_masked.shape
    OCp = ((OC + 127) // 128) * 128
    w = jnp.transpose(w_dense_masked, (2, 3, 1, 0))            # (K, K, IC, OC)
    w = jnp.pad(w, ((0, 0), (0, 0), (0, 0), (0, OCp - OC)))
    w = w.reshape(K * K, IC, OCp).astype(jnp.bfloat16)
    b = jnp.zeros((1, OCp), jnp.float32)
    if bias is not None:
        b = b.at[0, :OC].set(bias.astype(jnp.float32))
    return w, b


@functools.partial(jax.jit, static_argnames=("K", "OC", "padding", "stride"))
def sparse_conv2d_forward(x, w_prep, b_prep, *, K, OC, padding, stride):
    """x: (N, IC, H, W) f32; w_prep/b_prep from prepare_sparse_conv2d_params."""
    N, IC, H, W = x.shape
    OCp = w_prep.shape[-1]
    Hp, Wp = H + 2 * padding, W + 2 * padding
    OH = (Hp - K) // stride + 1
    OW = (Wp - K) // stride + 1
    toh = _pick_row_tile(OH, OW)
    n_oh_tiles = OH // toh

    # NCHW -> padded NHWC bf16 (channels last => IC on the lane axis for the MXU).
    xp = jnp.pad(x, ((0, 0), (0, 0), (padding, padding), (padding, padding)))
    xp = jnp.transpose(xp, (0, 2, 3, 1)).astype(jnp.bfloat16)   # (N, Hp, Wp, IC)

    kernel = functools.partial(_fused_conv2d_kernel,
                               K=K, stride=stride, toh=toh, OW=OW)

    # Explicit VMEM budget: double-buffered image/output blocks + resident weight.
    xb = Hp * Wp * IC * 2
    wb = K * K * IC * OCp * 2
    ob = toh * OW * OCp * 4
    vmem_limit = int(min(max(4 * (xb + wb + ob) + (2 << 20), 16 << 20), 48 << 20))

    cost = pl.CostEstimate(
        flops=2 * N * OH * OW * K * K * IC * OCp,
        transcendentals=0,
        bytes_accessed=N * xb + wb + N * OH * OW * OCp * 4,
    )

    out_flat = pl.pallas_call(
        kernel,
        out_shape=jax.ShapeDtypeStruct((N, OH * OW, OCp), jnp.float32),
        grid_spec=pltpu.PrefetchScalarGridSpec(
            num_scalar_prefetch=0,
            grid=(N, n_oh_tiles),
            in_specs=[
                # Full padded image per n; block index ignores the oh-tile axis,
                # so it is fetched once per image and reused across tiles.
                pl.BlockSpec((None, Hp, Wp, IC), lambda n, i: (n, 0, 0, 0)),
                pl.BlockSpec((K * K, IC, OCp), lambda n, i: (0, 0, 0)),
                pl.BlockSpec((1, OCp), lambda n, i: (0, 0)),
            ],
            out_specs=pl.BlockSpec((None, toh * OW, OCp), lambda n, i: (n, i, 0)),
        ),
        compiler_params=pltpu.CompilerParams(
            dimension_semantics=("parallel", "parallel"),
            vmem_limit_bytes=vmem_limit,
        ),
        cost_estimate=cost,
    )(xp, w_prep, b_prep)

    out = out_flat.reshape(N, OH, OW, OCp)[:, :, :, :OC]
    return jnp.transpose(out, (0, 3, 1, 2))                     # -> NCHW


if __name__ == "__main__":
    # Deterministic synthetic parameters (shapes implied by the module ctor).
    N, IC, H, W = 2, 4, 16, 16
    OC, K = 8, 3
    padding, stride = 1, 1

    key = jax.random.PRNGKey(0)
    k_x, k_w, k_m, k_b = jax.random.split(key, 4)

    x = jax.random.normal(k_x, (N, IC, H, W), dtype=jnp.float32)
    dense_weight = jax.random.normal(k_w, (OC, IC, K, K), dtype=jnp.float32)
    # Sparsify deterministically (~50% zeros) — equivalent to to_sparse_format_conv2d
    # followed by reconstruction; forward semantics only depend on the masked weight.
    mask = (jax.random.uniform(k_m, (OC, IC, K, K)) > 0.5).astype(jnp.float32)
    w_sparse = dense_weight * mask
    bias = jax.random.normal(k_b, (OC,), dtype=jnp.float32)

    w_prep, b_prep = prepare_sparse_conv2d_params(w_sparse, bias)   # "model load"
    out = sparse_conv2d_forward(x, w_prep, b_prep,
                                K=K, OC=OC, padding=padding, stride=stride)
    out = jax.block_until_ready(out)

    # Reference: f32 conv on the bf16-quantized operands (the kernel feeds the
    # MXU in bf16 with f32 accumulation, so quantize the reference identically).
    xq = x.astype(jnp.bfloat16).astype(jnp.float32)
    wq = w_sparse.astype(jnp.bfloat16).astype(jnp.float32)
    ref = jax.lax.conv_general_dilated(
        xq, wq, window_strides=(stride, stride),
        padding=((padding, padding), (padding, padding)),
        dimension_numbers=("NCHW", "OIHW", "NCHW"),
        precision=jax.lax.Precision.HIGHEST,
    ) + bias.reshape(1, OC, 1, 1)
    assert out.shape == (N, OC, H, W)
    assert jnp.allclose(out, ref, atol=2e-3, rtol=2e-3), float(jnp.max(jnp.abs(out - ref)))

    print("KERNEL_OK")
</pallas_src>

<mosaic_0001>
module attributes {stable_mosaic.version = 11 : i64} {
  func.func @_fused_conv2d_kernel(%arg0: i32, %arg1: i32, %arg2: memref<1x18x18x4xbf16, #tpu.memory_space<vmem>>, %arg3: memref<9x4x128xbf16, #tpu.memory_space<vmem>>, %arg4: memref<1x128xf32, #tpu.memory_space<vmem>>, %arg5: memref<1x256x128xf32, #tpu.memory_space<vmem>>) attributes {dimension_semantics = [#tpu.dimension_semantics<parallel>, #tpu.dimension_semantics<parallel>], iteration_bounds = array<i64: 2, 1>, scalar_prefetch = 0 : i64, scratch_operands = 0 : i64, tpu.core_type = #tpu.core_type<tc>, window_params = [{transform_indices = @transform_0, window_bounds = array<i64: 1, 18, 18, 4>}, {pipeline_mode = #tpu.pipeline_mode<synchronous>, transform_indices = @transform_1, window_bounds = array<i64: 9, 4, 128>}, {pipeline_mode = #tpu.pipeline_mode<synchronous>, transform_indices = @transform_2, window_bounds = array<i64: 1, 128>}, {transform_indices = @transform_3, window_bounds = array<i64: 1, 256, 128>}]} {
    %c16_i32 = arith.constant 16 : i32
    %0 = arith.muli %arg1, %c16_i32 : i32
    %cst = arith.constant 0.000000e+00 : f32
    %1 = vector.broadcast %cst : f32 to vector<256x128xf32>
    %c0_i32 = arith.constant 0 : i32
    %2 = arith.addi %0, %c0_i32 : i32
    %c0 = arith.constant 0 : index
    %3 = arith.index_cast %2 : i32 to index
    %c0_0 = arith.constant 0 : index
    %c0_1 = arith.constant 0 : index
    %4 = vector.load %arg2[%c0, %3, %c0_0, %c0_1] : memref<1x18x18x4xbf16, #tpu.memory_space<vmem>>, vector<1x16x16x4xbf16>
    %5 = vector.shape_cast %4 : vector<1x16x16x4xbf16> to vector<16x16x4xbf16>
    %6 = vector.shape_cast %5 : vector<16x16x4xbf16> to vector<256x4xbf16>
    %c0_2 = arith.constant 0 : index
    %c0_3 = arith.constant 0 : index
    %c0_4 = arith.constant 0 : index
    %7 = vector.load %arg3[%c0_2, %c0_3, %c0_4] : memref<9x4x128xbf16, #tpu.memory_space<vmem>>, vector<1x4x128xbf16>
    %8 = vector.shape_cast %7 : vector<1x4x128xbf16> to vector<4x128xbf16>
    %cst_5 = arith.constant dense<0.000000e+00> : vector<256x128xf32>
    %9 = tpu.matmul %6, %8, %cst_5 {dimension_numbers = #tpu.dot_dimension_numbers<[1], [0], [0], [1], [0, 0, 1, 1], [], []>} : vector<256x4xbf16>, vector<4x128xbf16>, vector<256x128xf32> -> vector<256x128xf32>
    %10 = arith.addf %1, %9 : vector<256x128xf32>
    %c0_i32_6 = arith.constant 0 : i32
    %11 = arith.addi %0, %c0_i32_6 : i32
    %c0_7 = arith.constant 0 : index
    %12 = arith.index_cast %11 : i32 to index
    %c1 = arith.constant 1 : index
    %c0_8 = arith.constant 0 : index
    %13 = vector.load %arg2[%c0_7, %12, %c1, %c0_8] : memref<1x18x18x4xbf16, #tpu.memory_space<vmem>>, vector<1x16x16x4xbf16>
    %14 = vector.shape_cast %13 : vector<1x16x16x4xbf16> to vector<16x16x4xbf16>
    %15 = vector.shape_cast %14 : vector<16x16x4xbf16> to vector<256x4xbf16>
    %c1_9 = arith.constant 1 : index
    %c0_10 = arith.constant 0 : index
    %c0_11 = arith.constant 0 : index
    %16 = vector.load %arg3[%c1_9, %c0_10, %c0_11] : memref<9x4x128xbf16, #tpu.memory_space<vmem>>, vector<1x4x128xbf16>
    %17 = vector.shape_cast %16 : vector<1x4x128xbf16> to vector<4x128xbf16>
    %cst_12 = arith.constant dense<0.000000e+00> : vector<256x128xf32>
    %18 = tpu.matmul %15, %17, %cst_12 {dimension_numbers = #tpu.dot_dimension_numbers<[1], [0], [0], [1], [0, 0, 1, 1], [], []>} : vector<256x4xbf16>, vector<4x128xbf16>, vector<256x128xf32> -> vector<256x128xf32>
    %19 = arith.addf %10, %18 : vector<256x128xf32>
    %c0_i32_13 = arith.constant 0 : i32
    %20 = arith.addi %0, %c0_i32_13 : i32
    %c0_14 = arith.constant 0 : index
    %21 = arith.index_cast %20 : i32 to index
    %c2 = arith.constant 2 : index
    %c0_15 = arith.constant 0 : index
    %22 = vector.load %arg2[%c0_14, %21, %c2, %c0_15] : memref<1x18x18x4xbf16, #tpu.memory_space<vmem>>, vector<1x16x16x4xbf16>
    %23 = vector.shape_cast %22 : vector<1x16x16x4xbf16> to vector<16x16x4xbf16>
    %24 = vector.shape_cast %23 : vector<16x16x4xbf16> to vector<256x4xbf16>
    %c2_16 = arith.constant 2 : index
    %c0_17 = arith.constant 0 : index
    %c0_18 = arith.constant 0 : index
    %25 = vector.load %arg3[%c2_16, %c0_17, %c0_18] : memref<9x4x128xbf16, #tpu.memory_space<vmem>>, vector<1x4x128xbf16>
    %26 = vector.shape_cast %25 : vector<1x4x128xbf16> to vector<4x128xbf16>
    %cst_19 = arith.constant dense<0.000000e+00> : vector<256x128xf32>
    %27 = tpu.matmul %24, %26, %cst_19 {dimension_numbers = #tpu.dot_dimension_numbers<[1], [0], [0], [1], [0, 0, 1, 1], [], []>} : vector<256x4xbf16>, vector<4x128xbf16>, vector<256x128xf32> -> vector<256x128xf32>
    %28 = arith.addf %19, %27 : vector<256x128xf32>
    %c1_i32 = arith.constant 1 : i32
    %29 = arith.addi %0, %c1_i32 : i32
    %c0_20 = arith.constant 0 : index
    %30 = arith.index_cast %29 : i32 to index
    %c0_21 = arith.constant 0 : index
    %c0_22 = arith.constant 0 : index
    %31 = vector.load %arg2[%c0_20, %30, %c0_21, %c0_22] : memref<1x18x18x4xbf16, #tpu.memory_space<vmem>>, vector<1x16x16x4xbf16>
    %32 = vector.shape_cast %31 : vector<1x16x16x4xbf16> to vector<16x16x4xbf16>
    %33 = vector.shape_cast %32 : vector<16x16x4xbf16> to vector<256x4xbf16>
    %c3 = arith.constant 3 : index
    %c0_23 = arith.constant 0 : index
    %c0_24 = arith.constant 0 : index
    %34 = vector.load %arg3[%c3, %c0_23, %c0_24] : memref<9x4x128xbf16, #tpu.memory_space<vmem>>, vector<1x4x128xbf16>
    %35 = vector.shape_cast %34 : vector<1x4x128xbf16> to vector<4x128xbf16>
    %cst_25 = arith.constant dense<0.000000e+00> : vector<256x128xf32>
    %36 = tpu.matmul %33, %35, %cst_25 {dimension_numbers = #tpu.dot_dimension_numbers<[1], [0], [0], [1], [0, 0, 1, 1], [], []>} : vector<256x4xbf16>, vector<4x128xbf16>, vector<256x128xf32> -> vector<256x128xf32>
    %37 = arith.addf %28, %36 : vector<256x128xf32>
    %c1_i32_26 = arith.constant 1 : i32
    %38 = arith.addi %0, %c1_i32_26 : i32
    %c0_27 = arith.constant 0 : index
    %39 = arith.index_cast %38 : i32 to index
    %c1_28 = arith.constant 1 : index
    %c0_29 = arith.constant 0 : index
    %40 = vector.load %arg2[%c0_27, %39, %c1_28, %c0_29] : memref<1x18x18x4xbf16, #tpu.memory_space<vmem>>, vector<1x16x16x4xbf16>
    %41 = vector.shape_cast %40 : vector<1x16x16x4xbf16> to vector<16x16x4xbf16>
    %42 = vector.shape_cast %41 : vector<16x16x4xbf16> to vector<256x4xbf16>
    %c4 = arith.constant 4 : index
    %c0_30 = arith.constant 0 : index
    %c0_31 = arith.constant 0 : index
    %43 = vector.load %arg3[%c4, %c0_30, %c0_31] : memref<9x4x128xbf16, #tpu.memory_space<vmem>>, vector<1x4x128xbf16>
    %44 = vector.shape_cast %43 : vector<1x4x128xbf16> to vector<4x128xbf16>
    %cst_32 = arith.constant dense<0.000000e+00> : vector<256x128xf32>
    %45 = tpu.matmul %42, %44, %cst_32 {dimension_numbers = #tpu.dot_dimension_numbers<[1], [0], [0], [1], [0, 0, 1, 1], [], []>} : vector<256x4xbf16>, vector<4x128xbf16>, vector<256x128xf32> -> vector<256x128xf32>
    %46 = arith.addf %37, %45 : vector<256x128xf32>
    %c1_i32_33 = arith.constant 1 : i32
    %47 = arith.addi %0, %c1_i32_33 : i32
    %c0_34 = arith.constant 0 : index
    %48 = arith.index_cast %47 : i32 to index
    %c2_35 = arith.constant 2 : index
    %c0_36 = arith.constant 0 : index
    %49 = vector.load %arg2[%c0_34, %48, %c2_35, %c0_36] : memref<1x18x18x4xbf16, #tpu.memory_space<vmem>>, vector<1x16x16x4xbf16>
    %50 = vector.shape_cast %49 : vector<1x16x16x4xbf16> to vector<16x16x4xbf16>
    %51 = vector.shape_cast %50 : vector<16x16x4xbf16> to vector<256x4xbf16>
    %c5 = arith.constant 5 : index
    %c0_37 = arith.constant 0 : index
    %c0_38 = arith.constant 0 : index
    %52 = vector.load %arg3[%c5, %c0_37, %c0_38] : memref<9x4x128xbf16, #tpu.memory_space<vmem>>, vector<1x4x128xbf16>
    %53 = vector.shape_cast %52 : vector<1x4x128xbf16> to vector<4x128xbf16>
    %cst_39 = arith.constant dense<0.000000e+00> : vector<256x128xf32>
    %54 = tpu.matmul %51, %53, %cst_39 {dimension_numbers = #tpu.dot_dimension_numbers<[1], [0], [0], [1], [0, 0, 1, 1], [], []>} : vector<256x4xbf16>, vector<4x128xbf16>, vector<256x128xf32> -> vector<256x128xf32>
    %55 = arith.addf %46, %54 : vector<256x128xf32>
    %c2_i32 = arith.constant 2 : i32
    %56 = arith.addi %0, %c2_i32 : i32
    %c0_40 = arith.constant 0 : index
    %57 = arith.index_cast %56 : i32 to index
    %c0_41 = arith.constant 0 : index
    %c0_42 = arith.constant 0 : index
    %58 = vector.load %arg2[%c0_40, %57, %c0_41, %c0_42] : memref<1x18x18x4xbf16, #tpu.memory_space<vmem>>, vector<1x16x16x4xbf16>
    %59 = vector.shape_cast %58 : vector<1x16x16x4xbf16> to vector<16x16x4xbf16>
    %60 = vector.shape_cast %59 : vector<16x16x4xbf16> to vector<256x4xbf16>
    %c6 = arith.constant 6 : index
    %c0_43 = arith.constant 0 : index
    %c0_44 = arith.constant 0 : index
    %61 = vector.load %arg3[%c6, %c0_43, %c0_44] : memref<9x4x128xbf16, #tpu.memory_space<vmem>>, vector<1x4x128xbf16>
    %62 = vector.shape_cast %61 : vector<1x4x128xbf16> to vector<4x128xbf16>
    %cst_45 = arith.constant dense<0.000000e+00> : vector<256x128xf32>
    %63 = tpu.matmul %60, %62, %cst_45 {dimension_numbers = #tpu.dot_dimension_numbers<[1], [0], [0], [1], [0, 0, 1, 1], [], []>} : vector<256x4xbf16>, vector<4x128xbf16>, vector<256x128xf32> -> vector<256x128xf32>
    %64 = arith.addf %55, %63 : vector<256x128xf32>
    %c2_i32_46 = arith.constant 2 : i32
    %65 = arith.addi %0, %c2_i32_46 : i32
    %c0_47 = arith.constant 0 : index
    %66 = arith.index_cast %65 : i32 to index
    %c1_48 = arith.constant 1 : index
    %c0_49 = arith.constant 0 : index
    %67 = vector.load %arg2[%c0_47, %66, %c1_48, %c0_49] : memref<1x18x18x4xbf16, #tpu.memory_space<vmem>>, vector<1x16x16x4xbf16>
    %68 = vector.shape_cast %67 : vector<1x16x16x4xbf16> to vector<16x16x4xbf16>
    %69 = vector.shape_cast %68 : vector<16x16x4xbf16> to vector<256x4xbf16>
    %c7 = arith.constant 7 : index
    %c0_50 = arith.constant 0 : index
    %c0_51 = arith.constant 0 : index
    %70 = vector.load %arg3[%c7, %c0_50, %c0_51] : memref<9x4x128xbf16, #tpu.memory_space<vmem>>, vector<1x4x128xbf16>
    %71 = vector.shape_cast %70 : vector<1x4x128xbf16> to vector<4x128xbf16>
    %cst_52 = arith.constant dense<0.000000e+00> : vector<256x128xf32>
    %72 = tpu.matmul %69, %71, %cst_52 {dimension_numbers = #tpu.dot_dimension_numbers<[1], [0], [0], [1], [0, 0, 1, 1], [], []>} : vector<256x4xbf16>, vector<4x128xbf16>, vector<256x128xf32> -> vector<256x128xf32>
    %73 = arith.addf %64, %72 : vector<256x128xf32>
    %c2_i32_53 = arith.constant 2 : i32
    %74 = arith.addi %0, %c2_i32_53 : i32
    %c0_54 = arith.constant 0 : index
    %75 = arith.index_cast %74 : i32 to index
    %c2_55 = arith.constant 2 : index
    %c0_56 = arith.constant 0 : index
    %76 = vector.load %arg2[%c0_54, %75, %c2_55, %c0_56] : memref<1x18x18x4xbf16, #tpu.memory_space<vmem>>, vector<1x16x16x4xbf16>
    %77 = vector.shape_cast %76 : vector<1x16x16x4xbf16> to vector<16x16x4xbf16>
    %78 = vector.shape_cast %77 : vector<16x16x4xbf16> to vector<256x4xbf16>
    %c8 = arith.constant 8 : index
    %c0_57 = arith.constant 0 : index
    %c0_58 = arith.constant 0 : index
    %79 = vector.load %arg3[%c8, %c0_57, %c0_58] : memref<9x4x128xbf16, #tpu.memory_space<vmem>>, vector<1x4x128xbf16>
    %80 = vector.shape_cast %79 : vector<1x4x128xbf16> to vector<4x128xbf16>
    %cst_59 = arith.constant dense<0.000000e+00> : vector<256x128xf32>
    %81 = tpu.matmul %78, %80, %cst_59 {dimension_numbers = #tpu.dot_dimension_numbers<[1], [0], [0], [1], [0, 0, 1, 1], [], []>} : vector<256x4xbf16>, vector<4x128xbf16>, vector<256x128xf32> -> vector<256x128xf32>
    %82 = arith.addf %73, %81 : vector<256x128xf32>
    %c0_60 = arith.constant 0 : index
    %c0_61 = arith.constant 0 : index
    %83 = vector.load %arg4[%c0_60, %c0_61] : memref<1x128xf32, #tpu.memory_space<vmem>>, vector<1x128xf32>
    %84 = vector.broadcast %83 : vector<1x128xf32> to vector<256x128xf32>
    %85 = arith.addf %82, %84 : vector<256x128xf32>
    %c0_62 = arith.constant 0 : index
    %c0_63 = arith.constant 0 : index
    %c0_64 = arith.constant 0 : index
    %86 = vector.load %arg5[%c0_62, %c0_63, %c0_64] : memref<1x256x128xf32, #tpu.memory_space<vmem>>, vector<1x256x128xf32>
    %87 = vector.shape_cast %86 : vector<1x256x128xf32> to vector<256x128xf32>
    %88 = vector.shape_cast %85 : vector<256x128xf32> to vector<1x256x128xf32>
    tpu.vector_store %arg5[%c0_62, %c0_63, %c0_64], %88 {strides = array<i32>} : memref<1x256x128xf32, #tpu.memory_space<vmem>>, vector<1x256x128xf32>,
    return
  }
  func.func @transform_0(%arg0: i32, %arg1: i32) -> (i32, i32, i32, i32) {
    %c0_i32 = arith.constant 0 : i32
    %c0_i32_0 = arith.constant 0 : i32
    %c0_i32_1 = arith.constant 0 : i32
    %c0_i32_2 = arith.constant 0 : i32
    return %arg0, %c0_i32, %c0_i32_0, %c0_i32_1 : i32, i32, i32, i32
  }
  func.func @transform_1(%arg0: i32, %arg1: i32) -> (i32, i32, i32) {
    %c0_i32 = arith.constant 0 : i32
    %c0_i32_0 = arith.constant 0 : i32
    %c0_i32_1 = arith.constant 0 : i32
    %c0_i32_2 = arith.constant 0 : i32
    return %c0_i32, %c0_i32_0, %c0_i32_1 : i32, i32, i32
  }
  func.func @transform_2(%arg0: i32, %arg1: i32) -> (i32, i32) {
    %c0_i32 = arith.constant 0 : i32
    %c0_i32_0 = arith.constant 0 : i32
    %c0_i32_1 = arith.constant 0 : i32
    return %c0_i32, %c0_i32_0 : i32, i32
  }
  func.func @transform_3(%arg0: i32, %arg1: i32) -> (i32, i32, i32) {
    %c0_i32 = arith.constant 0 : i32
    %c0_i32_0 = arith.constant 0 : i32
    return %arg0, %arg1, %c0_i32 : i32, i32, i32
  }
}

</mosaic_0001>

<bundles_post_ra>
// kernel: sparse_conv2d_forward.1
= control target key start
LH: loop header
LB: loop body
LE: loop exit
PB: predicated region body
PF: predicated region fallthrough
CT: control target
= control target key end

     0   :  { %s6375_s12 = smov 0   ;;  %s6377_s13 = smov 0   ;;  %s8180_s0 = inlined_call_operand.vmem [shape: bf16[2,18,18,4], index: 0, kind: input, shape index: {}]   ;;  %s8181_s1 = inlined_call_operand.vmem [shape: bf16[9,4,128], index: 1, kind: input, shape index: {}]   ;;  %s8182_s2 = inlined_call_operand.vmem [shape: f32[1,128], index: 2, kind: input, shape index: {}]   ;;  %s8183_s3 = inlined_call_operand.vmem [shape: f32[2,256,128], index: 3, kind: output, shape index: {}]  }
   0x1   :  { %s6379_s14 = smov 0  }
   0x2 LB: > { %s25_s15 = sadd.s32 1, %s6349_s13  ;;  %p4930_p0 = scmp.ge.s32.totalorder %s6353_s14, 1  ;;  %s6353_s14 = sphi %s6379_s14, %s13_s14   ;;  %s6349_s13 = sphi %s6377_s13, %s8252_s13   ;;  %s6345_s12 = sphi %s6375_s12, %s8251_s12  }
   0x3   : > { %p27_p1 = scmp.ge.s32.totalorder %s25_s15, 2  ;;  %p151_p2 = scmp.lt.s32.totalorder %s6353_s14, 3 }
   0x5   : > { %s8254_s15 = smov (%p27_p1, %s25_s15), 0  ;;  %p152_p3 = pnand %p4930_p0, %p151_p2 }
   0x7   : > { %155 = sbr.rel (%p152_p3) target bundleno = 586 (0x24a), region = 32 }
   0xe   : > { %v4934_v0 = vld [vmem:[%s8181_s1 + $0x2] sm:$0x3]  ;;  %vm734_vm0 = vcmask 1041408   ;;  %v5161_v1 = vld [vmem:[%s8181_s1 + $0x8] sm:$0x3]  ;;  %p179_p4 = scmp.lt.s32.totalorder %s6345_s12, 1 }
   0xf   : > { %6191 = vmatprep.subr.msk.bf16.mxu1 %vm734_vm0, %v4934_v0  ;;  %6195 = vmatprep.subr.msk.bf16.mxu0 %vm734_vm0, %v5161_v1  ;;  %v736_v2 = vsel %vm734_vm0, %v4934_v0, 0  ;;  %v6403_v3 = vsel %vm734_vm0, %v5161_v1, 0  ;;  %v231_v4 = vld [vmem:[%s8181_s1] sm:$0x3]  ;;  %v5226_v5 = vld [vmem:[%s8181_s1 + $0xa] sm:$0x3] }
  0x10   : > { %8197 = vst [vmem:[#allocation2_spill] sm:$0xff] %v6403_v3  ;;  %5628 = vmatpush3.bf16.msra.mxu1 %v736_v2  ;;  %5764 = vmatpush3.bf16.msra.mxu0 %v6403_v3  ;;  %s8256_s12 = smov (!%p179_p4, %s6345_s12), 1  ;;  %vm248_vm1 = vsmask.f32 3328  ;;  %vm249_vm2 = vsmask.f32 7440 }
  0x11   : > { %6192 = vmatprep.subr.msk.bf16.mxu1 %vm734_vm0, %v231_v4  ;;  %6197 = vmatprep.subr.msk.bf16.mxu0 %vm734_vm0, %v5226_v5  ;;  %s6201_s24 = smul.u32 216, %s8256_s12  ;;  %vm685_vm3 = vcmask 31744   ;;  %v6433_v17 = vsel %vm734_vm0, %v231_v4, 0  ;;  %v6439_v26 = vld [vmem:[%s8181_s1 + $0xc] sm:$0x3]  ;;  %vm6446_vm4 = vmor %vm248_vm1, %vm249_vm2  ;;  %v6452_v37 = vsel %vm734_vm0, %v5226_v5, 0 }
  0x12   : > { %v6456_v41 = vsel %vm734_vm0, %v6439_v26, 0  ;;  %vm1239_vm5 = vcmask 1042432   ;;  %vm1240_vm6 = vcmask 1046532   ;;  %s5473_s19 = sshll.u32 %s8256_s12, 8 }
  0x13   : > { %s6420_s27 = scalar_lea.vmem %s8180_s0, %s6201_s24  ;;  %vm6672_vm7 = vmor %vm1239_vm5, %vm1240_vm6  ;;  %s8105_s24 = scalar_lea.vmem %s8183_s3, %s5473_s19 }
  0x14   : > { %v199_v6 = vld [vmem:[%s6420_s27] sm:$0xf]  ;;  %v200_v7 = vld [vmem:[%s6420_s27 + $0x4] sm:$0xf]  ;;  %v232_v8 = vld [vmem:[%s6420_s27 + $0x8] sm:$0x1] }
  0x15   : > { %v252_v9 = vshrl.u32 %v199_v6, 16  ;;  %v255_v10 = vshll.u32 %v199_v6, 16  ;;  %v261_v11 = vshll.u32 %v200_v7, 16  ;;  %v265_v12 = vshrl.u32 %v200_v7, 16  ;;  %v5113_v13 = vld [vmem:[%s6420_s27 + $0xc] sm:$0xf] }
  0x16   : > { %v271_v14 = vshll.u32 %v232_v8, 16  ;;  %v6427_v15 = vld [vmem:[%s6420_s27 + $0x10] sm:$0xf]  ;;  %v6430_v16 = vld [vmem:[%s6420_s27 + $0x14] sm:$0x1]  ;;  %v2059_v23 = vshrl.u32 %v5113_v13, 16 }
  0x17   : > { %v254_v18 = vrot.slane %v252_v9, 4  ;;  %v257_v19 = vrot.slane %v255_v10, 5  ;;  %v263_v20 = vrot.slane %v261_v11, 5  ;;  %v267_v21 = vrot.slane %v265_v12, 4  ;;  %v201_v31 = vld [vmem:[%s6420_s27 + $0xc] sm:$0xf] }
  0x18   : > { %v273_v22 = vrot.slane %v271_v14, 5  ;;  %v2062_v24 = vshll.u32 %v5113_v13, 16  ;;  %v2068_v25 = vshll.u32 %v6427_v15, 16  ;;  %v2072_v29 = vshrl.u32 %v6427_v15, 16  ;;  %v202_v36 = vld [vmem:[%s6420_s27 + $0x10] sm:$0xf] }
  0x19   : > { %v258_v27 = vor.u32 %v257_v19, %v254_v18  ;;  %v268_v28 = vor.u32 %v267_v21, %v263_v20  ;;  %v2078_v30 = vshll.u32 %v6430_v16, 16  ;;  %v2061_v33 = vrot.slane %v2059_v23, 4  ;;  %v233_v44 = vld [vmem:[%s6420_s27 + $0x14] sm:$0x1]  ;;  %v5116_v55 = vld [vmem:[%s6420_s27 + $0x18] sm:$0xf] }
  0x1a   : > { %v2064_v34 = vrot.slane %v2062_v24, 5  ;;  %v2070_v35 = vrot.slane %v2068_v25, 5  ;;  %v2074_v40 = vrot.slane %v2072_v29, 4  ;;  %v276_v45 = vshrl.u32 %v201_v31, 16  ;;  %v6465_v60 = vld [vmem:[%s6420_s27 + $0x1c] sm:$0xf] }
  0x1b   : > { %v259_v38 = vrot.slane %v258_v27, 4  ;;  %v269_v39 = vrot.slane %v268_v28, 4  ;;  %v2080_v43 = vrot.slane %v2078_v30, 5  ;;  %v279_v46 = vshll.u32 %v201_v31, 16  ;;  %v6473_v1 = vld [vmem:[%s6420_s27 + $0x20] sm:$0x1] }
  0x1c   : > { %v2065_v42 = vor.u32 %v2064_v34, %v2061_v33  ;;  %v2075_v49 = vor.u32 %v2074_v40, %v2070_v35  ;;  %v285_v50 = vshll.u32 %v202_v36, 16  ;;  %v278_v53 = vrot.slane %v276_v45, 4  ;;  %v203_v18 = vld [vmem:[%s6420_s27 + $0x18] sm:$0xf]  ;;  %v204_v23 = vld [vmem:[%s6420_s27 + $0x1c] sm:$0xf] }
  0x1d   : > { %v264_v47 = vsel %vm6446_vm4, %v259_v38, %v263_v20  ;;  %v274_v48 = vsel %vm6446_vm4, %v269_v39, %v273_v22  ;;  %v281_v54 = vrot.slane %v279_v46, 5  ;;  %v289_v58 = vshrl.u32 %v202_v36, 16  ;;  %v234_v31 = vld [vmem:[%s6420_s27 + $0x20] sm:$0x1]  ;;  %v5119_v40 = vld [vmem:[%s6420_s27 + $0x24] sm:$0xf] }
  0x1e   : > { %v4935_v51 = vcombine.low %v264_v47, %v274_v48  ;;  %v2066_v52 = vrot.slane %v2065_v42, 4  ;;  %v2076_v56 = vrot.slane %v2075_v49, 4  ;;  %v287_v57 = vrot.slane %v285_v50, 5  ;;  %v6496_v46 = vld [vmem:[%s6420_s27 + $0x28] sm:$0xf] }
  0x1f   : > { %v295_v59 = vshll.u32 %v233_v44, 16  ;;  %v2802_v62 = vrot.slane %v6427_v15, 5  ;;  %v2805_v63 = vrot.slane %v6430_v16, 5  ;;  %v282_v0 = vor.u32 %v281_v54, %v278_v53  ;;  %v6505_v54 = vld [vmem:[%s6420_s27 + $0x2c] sm:$0x1] }
  0x20   : > { %5629 = vmatprep.mubr.msk.bf16.mxu1 %vm685_vm3, %v4935_v51  ;;  %v2071_v61 = vsel %vm6446_vm4, %v2066_v52, %v2070_v35  ;;  %v2081_v2 = vsel %vm6446_vm4, %v2076_v56, %v2080_v43  ;;  %v291_v4 = vrot.slane %v289_v58, 4  ;;  %v2083_v6 = vshrl.u32 %v5116_v55, 16  ;;  %v5015_v51 = vld [vmem:[%s8181_s1 + $0x4] sm:$0x3]  ;;  %v6705_v16 = vld [vmem:[%s6420_s27 + $0x7c] sm:$0xf] }
  0x21   : > { %v297_v5 = vrot.slane %v295_v59, 5  ;;  %v5162_v7 = vcombine.low %v2071_v61, %v2081_v2  ;;  %v283_v8 = vrot.slane %v282_v0, 4  ;;  %v2086_v9 = vshll.u32 %v5116_v55, 16  ;;  %v205_v0 = vld [vmem:[%s6420_s27 + $0x24] sm:$0xf] }
  0x22   : > { %v2092_v10 = vshll.u32 %v6465_v60, 16  ;;  %v292_v11 = vor.u32 %v291_v4, %v287_v57  ;;  %v2085_v12 = vrot.slane %v2083_v6, 4  ;;  %v2096_v13 = vshrl.u32 %v6465_v60, 16 }
  0x23   : > { %v2102_v14 = vshll.u32 %v6473_v1, 16  ;;  %5765 = vmatprep.mubr.msk.bf16.mxu0 %vm685_vm3, %v5162_v7  ;;  %v288_v19 = vsel %vm6446_vm4, %v283_v8, %v287_v57  ;;  %v2088_v20 = vrot.slane %v2086_v9, 5  ;;  %v2809_v22 = vrot.slane %v6465_v60, 5  ;;  %v206_v7 = vld [vmem:[%s6420_s27 + $0x28] sm:$0xf] }
  0x24   : > { %v2094_v21 = vrot.slane %v2092_v10, 5  ;;  %v293_v24 = vrot.slane %v292_v11, 4  ;;  %v2098_v25 = vrot.slane %v2096_v13, 4  ;;  %v2812_v28 = vrot.slane %v6473_v1, 5  ;;  %v235_v13 = vld [vmem:[%s6420_s27 + $0x2c] sm:$0x1] }
  0x25   : > { %v2104_v27 = vrot.slane %v2102_v14, 5  ;;  %v2089_v29 = vor.u32 %v2088_v20, %v2085_v12  ;;  %v6489_v30 = vrot.slane %v2809_v22, 4  ;;  %v300_v33 = vshrl.u32 %v203_v18, 16 }
  0x26   : > { %v303_v34 = vshll.u32 %v203_v18, 16  ;;  %v298_v35 = vsel %vm6446_vm4, %v293_v24, %v297_v5  ;;  %v2099_v36 = vor.u32 %v2098_v25, %v2094_v21  ;;  %v309_v38 = vshll.u32 %v204_v23, 16  ;;  %v5122_v24 = vld [vmem:[%s6420_s27 + $0x30] sm:$0xf] }
  0x27   : > { %v313_v39 = vshrl.u32 %v204_v23, 16  ;;  %v4936_v42 = vcombine.low %v288_v19, %v298_v35  ;;  %v2090_v43 = vrot.slane %v2089_v29, 4  ;;  %v302_v44 = vrot.slane %v300_v33, 4  ;;  %v6525_v33 = vld [vmem:[%s6420_s27 + $0x34] sm:$0xf] }
  0x28   : > { %v305_v45 = vrot.slane %v303_v34, 5  ;;  %v2100_v47 = vrot.slane %v2099_v36, 4  ;;  %v311_v48 = vrot.slane %v309_v38, 5  ;;  %v319_v50 = vshll.u32 %v234_v31, 16 }
  0x29   : > { %v315_v49 = vrot.slane %v313_v39, 4  ;;  %5630 = vmatmul.mubr.msk.bf16.vlgmr.msra.gmra.mrb[0].mxu1 %vm685_vm3, %v4936_v42  ;;  %v2095_v52 = vsel %vm6446_vm4, %v2090_v43, %v2094_v21  ;;  %v2107_v55 = vshrl.u32 %v5119_v40, 16  ;;  %v2110_v56 = vshll.u32 %v5119_v40, 16  ;;  %v6533_v40 = vld [vmem:[%s6420_s27 + $0x38] sm:$0x1] }
  0x2a   : > { %v306_v53 = vor.u32 %v305_v45, %v302_v44  ;;  %5662 = vmatpush3.bf16.msra.mxu1 %v6433_v17  ;;  %v2105_v57 = vsel %vm6446_vm4, %v2100_v47, %v2104_v27  ;;  %v321_v59 = vrot.slane %v319_v50, 5  ;;  %v2116_v61 = vshll.u32 %v6496_v46, 16 }
  0x2b   : > { %v316_v58 = vor.u32 %v315_v49, %v311_v48  ;;  %v5163_v2 = vcombine.low %v2095_v52, %v2105_v57  ;;  %v2109_v5 = vrot.slane %v2107_v55, 4  ;;  %v2112_v6 = vrot.slane %v2110_v56, 5  ;;  %6193 = vmatprep.subr.msk.bf16.mxu1 %vm734_vm0, %v5015_v51  ;;  %v207_v52 = vld [vmem:[%s6420_s27 + $0x30] sm:$0xf] }
  0x2c   : > { %v307_v4 = vrot.slane %v306_v53, 4  ;;  %v2118_v9 = vrot.slane %v2116_v61, 5  ;;  %v2120_v17 = vshrl.u32 %v6496_v46, 16  ;;  %v2126_v10 = vshll.u32 %v6505_v54, 16 }
  0x2d   : > { %v317_v8 = vrot.slane %v316_v58, 4  ;;  %5766 = vmatmul.mubr.msk.bf16.vlgmr.msra.gmra.mrb[0].mxu0 %vm685_vm3, %v5163_v2  ;;  %v2113_v12 = vor.u32 %v2112_v6, %v2109_v5  ;;  %v324_v14 = vshrl.u32 %v205_v0, 16  ;;  %v327_v18 = vshll.u32 %v205_v0, 16  ;;  %v208_v58 = vld [vmem:[%s6420_s27 + $0x34] sm:$0xf] }
  0x2e   : > { %v312_v11 = vsel %vm6446_vm4, %v307_v4, %v311_v48  ;;  %5798 = vmatpush3.bf16.msra.mxu0 %v6452_v37  ;;  %v2122_v20 = vrot.slane %v2120_v17, 4  ;;  %v2128_v21 = vrot.slane %v2126_v10, 5  ;;  %v333_v23 = vshll.u32 %v206_v7, 16  ;;  %v236_v4 = vld [vmem:[%s6420_s27 + $0x38] sm:$0x1] }
  0x2f   : > { %v322_v19 = vsel %vm6446_vm4, %v317_v8, %v321_v59  ;;  %v2114_v27 = vrot.slane %v2113_v12, 4  ;;  %v326_v29 = vrot.slane %v324_v14, 4  ;;  %v329_v31 = vrot.slane %v327_v18, 5  ;;  %6198 = vmatprep.subr.msk.bf16.mxu0 %vm734_vm0, %v6439_v26  ;;  %v5125_v12 = vld [vmem:[%s6420_s27 + $0x3c] sm:$0xf] }
  0x30   : > { %v4937_v25 = vcombine.low %v312_v11, %v322_v19  ;;  %v2123_v34 = vor.u32 %v2122_v20, %v2118_v9  ;;  %v335_v35 = vrot.slane %v333_v23, 5  ;;  %v337_v37 = vshrl.u32 %v206_v7, 16  ;;  %v6550_v20 = vld [vmem:[%s6420_s27 + $0x40] sm:$0xf] }
  0x31   : > { %v343_v36 = vshll.u32 %v235_v13, 16  ;;  %v2119_v38 = vsel %vm6446_vm4, %v2114_v27, %v2118_v9  ;;  %v330_v39 = vor.u32 %v329_v31, %v326_v29  ;;  %v2131_v42 = vshrl.u32 %v5122_v24, 16 }
  0x32   : > { %5633 = vmatprep.mubr.msk.bf16.mxu1 %vm685_vm3, %v4937_v25  ;;  %v2134_v43 = vshll.u32 %v5122_v24, 16  ;;  %v2124_v44 = vrot.slane %v2123_v34, 4  ;;  %v339_v45 = vrot.slane %v337_v37, 4  ;;  %v2140_v26 = vshll.u32 %v6525_v33, 16  ;;  %v6555_v34 = vld [vmem:[%s6420_s27 + $0x44] sm:$0x1] }
  0x33   : > { %v345_v47 = vrot.slane %v343_v36, 5  ;;  %v331_v48 = vrot.slane %v330_v39, 4  ;;  %v2133_v49 = vrot.slane %v2131_v42, 4  ;;  %v2144_v51 = vshrl.u32 %v6525_v33, 16  ;;  %v209_v42 = vld [vmem:[%s6420_s27 + $0x3c] sm:$0xf] }
  0x34   : > { %v2136_v50 = vrot.slane %v2134_v43, 5  ;;  %v2129_v53 = vsel %vm6446_vm4, %v2124_v44, %v2128_v21  ;;  %v340_v55 = vor.u32 %v339_v45, %v335_v35  ;;  %v2142_v56 = vrot.slane %v2140_v26, 5  ;;  %v210_v26 = vld [vmem:[%s6420_s27 + $0x40] sm:$0xf] }
  0x35   : > { %v2150_v57 = vshll.u32 %v6533_v40, 16  ;;  %v5164_v59 = vcombine.low %v2119_v38, %v2129_v53  ;;  %v336_v61 = vsel %vm6446_vm4, %v331_v48, %v335_v35  ;;  %v2146_v2 = vrot.slane %v2144_v51, 4 }
  0x36   : > { %v2137_v0 = vor.u32 %v2136_v50, %v2133_v49  ;;  %v341_v5 = vrot.slane %v340_v55, 4  ;;  %v348_v7 = vshrl.u32 %v207_v52, 16  ;;  %v351_v8 = vshll.u32 %v207_v52, 16 }
  0x37   : > { %v2152_v6 = vrot.slane %v2150_v57, 5  ;;  %5769 = vmatprep.mubr.msk.bf16.mxu0 %vm685_vm3, %v5164_v59  ;;  %v2147_v17 = vor.u32 %v2146_v2, %v2142_v56  ;;  %v357_v10 = vshll.u32 %v208_v58, 16  ;;  %v361_v11 = vshrl.u32 %v208_v58, 16  ;;  %v5128_v2 = vld [vmem:[%s6420_s27 + $0x48] sm:$0xf] }
  0x38   : > { %v2138_v9 = vrot.slane %v2137_v0, 4  ;;  %v346_v13 = vsel %vm6446_vm4, %v341_v5, %v345_v47  ;;  %v350_v14 = vrot.slane %v348_v7, 4  ;;  %v353_v18 = vrot.slane %v351_v8, 5  ;;  %v6573_v8 = vld [vmem:[%s6420_s27 + $0x4c] sm:$0xf] }
  0x39   : > { %v367_v19 = vshll.u32 %v236_v4, 16  ;;  %v4938_v21 = vcombine.low %v336_v61, %v346_v13  ;;  %v2148_v24 = vrot.slane %v2147_v17, 4  ;;  %v359_v25 = vrot.slane %v357_v10, 5  ;;  %v237_v61 = vld [vmem:[%s6420_s27 + $0x44] sm:$0x1] }
  0x3a   : > { %v2143_v23 = vsel %vm6446_vm4, %v2138_v9, %v2142_v56  ;;  %v354_v27 = vor.u32 %v353_v18, %v350_v14  ;;  %v363_v29 = vrot.slane %v361_v11, 4  ;;  %v2155_v35 = vshrl.u32 %v5125_v12, 16 }
  0x3b   : > { %v369_v31 = vrot.slane %v367_v19, 5  ;;  %5634 = vmatmul.mubr.msk.bf16.gmra.mrb[4].mxu1 %vm685_vm3, %v4938_v21  ;;  %v2153_v37 = vsel %vm6446_vm4, %v2148_v24, %v2152_v6  ;;  %v2158_v36 = vshll.u32 %v5125_v12, 16  ;;  %v2164_v38 = vshll.u32 %v6550_v20, 16 }
  0x3c   : > { %v2168_v39 = vshrl.u32 %v6550_v20, 16  ;;  %v5165_v43 = vcombine.low %v2143_v23, %v2153_v37  ;;  %v355_v44 = vrot.slane %v354_v27, 4  ;;  %v364_v45 = vor.u32 %v363_v29, %v359_v25  ;;  %v6581_v23 = vld [vmem:[%s6420_s27 + $0x50] sm:$0x1]  ;;  %v6585_v27 = vld [vmem:[%s6420_s27 + $0x48] sm:$0xf] }
  0x3d   : > { %v2157_v47 = vrot.slane %v2155_v35, 4  ;;  %v2160_v48 = vrot.slane %v2158_v36, 5  ;;  %v2166_v49 = vrot.slane %v2164_v38, 5  ;;  %v2174_v51 = vshll.u32 %v6555_v34, 16  ;;  %v6588_v36 = vld [vmem:[%s6420_s27 + $0x4c] sm:$0xf] }
  0x3e   : > { %v2170_v50 = vrot.slane %v2168_v39, 4  ;;  %5770 = vmatmul.mubr.msk.bf16.gmra.mrb[4].mxu0 %vm685_vm3, %v5165_v43  ;;  %v360_v52 = vsel %vm6446_vm4, %v355_v44, %v359_v25  ;;  %v365_v53 = vrot.slane %v364_v45, 4  ;;  %v372_v55 = vshrl.u32 %v209_v42, 16 }
  0x3f   : > { %v375_v56 = vshll.u32 %v209_v42, 16  ;;  %v2161_v57 = vor.u32 %v2160_v48, %v2157_v47  ;;  %v2176_v59 = vrot.slane %v2174_v51, 5  ;;  %v381_v0 = vshll.u32 %v210_v26, 16 }
  0x40   : > { %v2171_v58 = vor.u32 %v2170_v50, %v2166_v49  ;;  %v370_v4 = vsel %vm6446_vm4, %v365_v53, %v369_v31  ;;  %v374_v5 = vrot.slane %v372_v55, 4  ;;  %v385_v7 = vshrl.u32 %v210_v26, 16  ;;  %v238_v26 = vld [vmem:[%s6420_s27 + $0x50] sm:$0x1]  ;;  %v5131_v53 = vld [vmem:[%s6420_s27 + $0x54] sm:$0xf] }
  0x41   : > { %v377_v6 = vrot.slane %v375_v56, 5  ;;  %v4939_v9 = vcombine.low %v360_v52, %v370_v4  ;;  %v2162_v17 = vrot.slane %v2161_v57, 4  ;;  %v383_v11 = vrot.slane %v381_v0, 5  ;;  %v6604_v4 = vld [vmem:[%s6420_s27 + $0x58] sm:$0xf] }
  0x42   : > { %v2172_v10 = vrot.slane %v2171_v58, 4  ;;  %v387_v13 = vrot.slane %v385_v7, 4  ;;  %v391_v14 = vshll.u32 %v237_v61, 16  ;;  %v2179_v18 = vshrl.u32 %v5128_v2, 16 }
  0x43   : > { %v378_v12 = vor.u32 %v377_v6, %v374_v5  ;;  %5637 = vmatprep.mubr.msk.bf16.mxu1 %vm685_vm3, %v4939_v9  ;;  %v2167_v19 = vsel %vm6446_vm4, %v2162_v17, %v2166_v49  ;;  %v2182_v24 = vshll.u32 %v5128_v2, 16  ;;  %v2188_v25 = vshll.u32 %v6573_v8, 16 }
  0x44   : > { %v2177_v21 = vsel %vm6446_vm4, %v2172_v10, %v2176_v59  ;;  %v388_v35 = vor.u32 %v387_v13, %v383_v11  ;;  %v393_v37 = vrot.slane %v391_v14, 5  ;;  %v2181_v38 = vrot.slane %v2179_v18, 4 }
  0x45   : > { %v5166_v29 = vcombine.low %v2167_v19, %v2177_v21  ;;  %v379_v31 = vrot.slane %v378_v12, 4  ;;  %v2184_v39 = vrot.slane %v2182_v24, 5  ;;  %v2190_v42 = vrot.slane %v2188_v25, 5  ;;  %v6610_v12 = vld [vmem:[%s6420_s27 + $0x5c] sm:$0x1] }
  0x46   : > { %v2192_v43 = vshrl.u32 %v6573_v8, 16  ;;  %v389_v45 = vrot.slane %v388_v35, 4  ;;  %v2198_v47 = vshll.u32 %v6581_v23, 16  ;;  %v396_v48 = vshrl.u32 %v6585_v27, 16  ;;  %v6614_v24 = vld [vmem:[%s6420_s27 + $0x54] sm:$0xf] }
  0x47   : > { %5773 = vmatprep.mubr.msk.bf16.mxu0 %vm685_vm3, %v5166_v29  ;;  %v384_v44 = vsel %vm6446_vm4, %v379_v31, %v383_v11  ;;  %v2185_v49 = vor.u32 %v2184_v39, %v2181_v38  ;;  %v399_v51 = vshll.u32 %v6585_v27, 16  ;;  %v405_v52 = vshll.u32 %v6588_v36, 16 }
  0x48   : > { %v2194_v50 = vrot.slane %v2192_v43, 4  ;;  %v394_v55 = vsel %vm6446_vm4, %v389_v45, %v393_v37  ;;  %v2200_v56 = vrot.slane %v2198_v47, 5  ;;  %v398_v57 = vrot.slane %v396_v48, 4  ;;  %v6620_v37 = vld [vmem:[%s6420_s27 + $0x58] sm:$0xf] }
  0x49   : > { %v409_v58 = vshrl.u32 %v6588_v36, 16  ;;  %v4940_v59 = vcombine.low %v384_v44, %v394_v55  ;;  %v2186_v61 = vrot.slane %v2185_v49, 4  ;;  %v401_v2 = vrot.slane %v399_v51, 5 }
  0x4a   : > { %v2195_v0 = vor.u32 %v2194_v50, %v2190_v42  ;;  %v407_v5 = vrot.slane %v405_v52, 5  ;;  %v415_v7 = vshll.u32 %v238_v26, 16  ;;  %v2203_v9 = vshrl.u32 %v5131_v53, 16  ;;  %v239_v26 = vld [vmem:[%s6420_s27 + $0x5c] sm:$0x1] }
  0x4b   : > { %v411_v6 = vrot.slane %v409_v58, 4  ;;  %5638 = vmatmul.mubr.msk.bf16.gmra.mrb[8].mxu1 %vm685_vm3, %v4940_v59  ;;  %v2191_v17 = vsel %vm6446_vm4, %v2186_v61, %v2190_v42  ;;  %v402_v11 = vor.u32 %v401_v2, %v398_v57  ;;  %v2206_v13 = vshll.u32 %v5131_v53, 16  ;;  %v5134_v53 = vld [vmem:[%s6420_s27 + $0x60] sm:$0xf]  ;;  %v6634_v59 = vld [vmem:[%s6420_s27 + $0x64] sm:$0xf] }
  0x4c   : > { %v2196_v10 = vrot.slane %v2195_v0, 4  ;;  %v417_v18 = vrot.slane %v415_v7, 5  ;;  %v2205_v19 = vrot.slane %v2203_v9, 4  ;;  %v2212_v21 = vshll.u32 %v6604_v4, 16  ;;  %v6641_v9 = vld [vmem:[%s6420_s27 + $0x68] sm:$0x1] }
  0x4d   : > { %v412_v14 = vor.u32 %v411_v6, %v407_v5  ;;  %v403_v29 = vrot.slane %v402_v11, 4  ;;  %v2208_v31 = vrot.slane %v2206_v13, 5  ;;  %v2216_v35 = vshrl.u32 %v6604_v4, 16 }
  0x4e   : > { %v2201_v25 = vsel %vm6446_vm4, %v2196_v10, %v2200_v56  ;;  %v2214_v42 = vrot.slane %v2212_v21, 5  ;;  %v2222_v43 = vshll.u32 %v6610_v12, 16  ;;  %v420_v48 = vshrl.u32 %v6614_v24, 16 }
  0x4f   : > { %v5167_v38 = vcombine.low %v2191_v17, %v2201_v25  ;;  %v413_v39 = vrot.slane %v412_v14, 4  ;;  %v408_v44 = vsel %vm6446_vm4, %v403_v29, %v407_v5  ;;  %v2209_v45 = vor.u32 %v2208_v31, %v2205_v19  ;;  %v6645_v19 = vld [vmem:[%s6420_s27 + $0x60] sm:$0xf] }
  0x50   : > { %v2218_v47 = vrot.slane %v2216_v35, 4  ;;  %v2224_v50 = vrot.slane %v2222_v43, 5  ;;  %v423_v51 = vshll.u32 %v6614_v24, 16  ;;  %v429_v52 = vshll.u32 %v6620_v37, 16  ;;  %v6651_v35 = vld [vmem:[%s6420_s27 + $0x64] sm:$0xf] }
  0x51   : > { %5774 = vmatmul.mubr.msk.bf16.gmra.mrb[8].mxu0 %vm685_vm3, %v5167_v38  ;;  %v418_v49 = vsel %vm6446_vm4, %v413_v39, %v417_v18  ;;  %v2210_v56 = vrot.slane %v2209_v45, 4  ;;  %v422_v58 = vrot.slane %v420_v48, 4  ;;  %v433_v2 = vshrl.u32 %v6620_v37, 16 }
  0x52   : > { %v4941_v55 = vcombine.low %v408_v44, %v418_v49  ;;  %v2219_v57 = vor.u32 %v2218_v47, %v2214_v42  ;;  %v425_v61 = vrot.slane %v423_v51, 5  ;;  %v431_v0 = vrot.slane %v429_v52, 5 }
  0x53   : > { %v439_v5 = vshll.u32 %v239_v26, 16  ;;  %v2215_v6 = vsel %vm6446_vm4, %v2210_v56, %v2214_v42  ;;  %v2227_v17 = vshrl.u32 %v5134_v53, 16  ;;  %v2230_v10 = vshll.u32 %v5134_v53, 16 }
  0x54   : > { %5641 = vmatprep.mubr.msk.bf16.mxu1 %vm685_vm3, %v4941_v55  ;;  %v2220_v7 = vrot.slane %v2219_v57, 4  ;;  %v426_v11 = vor.u32 %v425_v61, %v422_v58  ;;  %v435_v13 = vrot.slane %v433_v2, 4  ;;  %v2236_v18 = vshll.u32 %v6634_v59, 16  ;;  %v5194_v58 = vld [vmem:[%s6420_s27 + $0xc] sm:$0xe] }
  0x55   : > { %v441_v14 = vrot.slane %v439_v5, 5  ;;  %v2229_v25 = vrot.slane %v2227_v17, 4  ;;  %v2232_v29 = vrot.slane %v2230_v10, 5  ;;  %v2240_v31 = vshrl.u32 %v6634_v59, 16 }
  0x56   : > { %v2225_v21 = vsel %vm6446_vm4, %v2220_v7, %v2224_v50  ;;  %v427_v39 = vrot.slane %v426_v11, 4  ;;  %v436_v42 = vor.u32 %v435_v13, %v431_v0  ;;  %v2238_v43 = vrot.slane %v2236_v18, 5  ;;  %v240_v50 = vld [vmem:[%s6420_s27 + $0x68] sm:$0x1] }
  0x57   : > { %v5168_v38 = vcombine.low %v2215_v6, %v2225_v21  ;;  %v2233_v44 = vor.u32 %v2232_v29, %v2229_v25  ;;  %v2242_v45 = vrot.slane %v2240_v31, 4  ;;  %v2246_v47 = vshll.u32 %v6641_v9, 16  ;;  %v6679_v29 = vld [vmem:[%s6420_s27 + $0x70] sm:$0xf] }
  0x58   : > { %v444_v26 = vshrl.u32 %v6645_v19, 16  ;;  %v432_v48 = vsel %vm6446_vm4, %v427_v39, %v431_v0  ;;  %v437_v49 = vrot.slane %v436_v42, 4  ;;  %v447_v51 = vshll.u32 %v6645_v19, 16  ;;  %v6666_v0 = vld [vmem:[%s6420_s27 + $0x6c] sm:$0xf] }
  0x59   : > { %5777 = vmatprep.mubr.msk.bf16.mxu0 %vm685_vm3, %v5168_v38  ;;  %v453_v52 = vshll.u32 %v6651_v35, 16  ;;  %v2234_v53 = vrot.slane %v2233_v44, 4  ;;  %v2243_v55 = vor.u32 %v2242_v45, %v2238_v43  ;;  %v2248_v56 = vrot.slane %v2246_v47, 5 }
  0x5a   : > { %v446_v57 = vrot.slane %v444_v26, 4  ;;  %v442_v61 = vsel %vm6446_vm4, %v437_v49, %v441_v14  ;;  %v449_v2 = vrot.slane %v447_v51, 5  ;;  %v457_v6 = vshrl.u32 %v6651_v35, 16  ;;  %v241_v26 = vld [vmem:[%s6420_s27 + $0x74] sm:$0x1] }
  0x5b   : > { %v455_v5 = vrot.slane %v453_v52, 5  ;;  %v4942_v7 = vcombine.low %v432_v48, %v442_v61  ;;  %v2239_v17 = vsel %vm6446_vm4, %v2234_v53, %v2238_v43  ;;  %v2244_v10 = vrot.slane %v2243_v55, 4  ;;  %v5195_v48 = vld [vmem:[%s6420_s27 + $0x18] sm:$0xe] }
  0x5c   : > { %v463_v11 = vshll.u32 %v240_v50, 16  ;;  %v450_v14 = vor.u32 %v449_v2, %v446_v57  ;;  %v459_v18 = vrot.slane %v457_v6, 4  ;;  %v5210_v21 = vrot.slane %v5194_v58, 9  ;;  %v6698_v53 = vld [vmem:[%s6420_s27 + $0x78] sm:$0xf] }
  0x5d   : > { %v2804_v25 = vrot.slane %v2802_v62, 4  ;;  %5642 = vmatmul.mubr.msk.bf16.gmra.mrb[12].mxu1 %vm685_vm3, %v4942_v7  ;;  %v2249_v31 = vsel %vm6446_vm4, %v2244_v10, %v2248_v56  ;;  %v468_v39 = vshrl.u32 %v6666_v0, 16  ;;  %v471_v42 = vshll.u32 %v6666_v0, 16  ;;  %v242_v57 = vld [vmem:[%s6420_s27 + $0x80] sm:$0x1] }
  0x5e   : > { %v465_v38 = vrot.slane %v463_v11, 5  ;;  %v5169_v43 = vcombine.low %v2239_v17, %v2249_v31  ;;  %v451_v44 = vrot.slane %v450_v14, 4  ;;  %v460_v45 = vor.u32 %v459_v18, %v455_v5  ;;  %v5196_v10 = vld [vmem:[%s6420_s27 + $0x24] sm:$0xe] }
  0x5f   : > { %v2803_v47 = vsel %vm6672_vm7, %v5210_v21, %v2802_v62  ;;  %v2806_v49 = vsel %vm6672_vm7, %v2804_v25, %v2805_v63  ;;  %v470_v50 = vrot.slane %v468_v39, 4  ;;  %v473_v51 = vrot.slane %v471_v42, 5  ;;  %v6724_v39 = vld [vmem:[%s6420_s27 + $0x84] sm:$0xf] }
  0x60   : > { %v477_v52 = vshll.u32 %v6679_v29, 16  ;;  %5778 = vmatmul.mubr.msk.bf16.gmra.mrb[12].mxu0 %vm685_vm3, %v5169_v43  ;;  %v456_v15 = vsel %vm6446_vm4, %v451_v44, %v455_v5  ;;  %v461_v62 = vrot.slane %v460_v45, 4  ;;  %v5227_v55 = vcombine.low %v2803_v47, %v2806_v49  ;;  %v6732_v43 = vld [vmem:[%s6420_s27 + $0x88] sm:$0xf] }
  0x61   : > { %v481_v56 = vshrl.u32 %v6679_v29, 16  ;;  %v474_v63 = vor.u32 %v473_v51, %v470_v50  ;;  %v487_v61 = vshll.u32 %v241_v26, 16  ;;  %v5211_v2 = vrot.slane %v5195_v48, 9 }
  0x62   : > { %v479_v58 = vrot.slane %v477_v52, 5  ;;  %v466_v6 = vsel %vm6446_vm4, %v461_v62, %v465_v38  ;;  %5799 = vmatprep.mubr.msk.bf16.mxu0 %vm685_vm3, %v5227_v55  ;;  %v2813_v5 = vsel %vm6672_vm7, %v6489_v30, %v2812_v28  ;;  %v492_v17 = vshrl.u32 %v6698_v53, 16  ;;  %v243_v52 = vld [vmem:[%s6420_s27 + $0x8c] sm:$0x1] }
  0x63   : > { %v483_v7 = vrot.slane %v481_v56, 4  ;;  %v4943_v11 = vcombine.low %v456_v15, %v466_v6  ;;  %v475_v14 = vrot.slane %v474_v63, 4  ;;  %v489_v18 = vrot.slane %v487_v61, 5 }
  0x64   : > { %v2810_v21 = vsel %vm6672_vm7, %v5211_v2, %v2809_v22  ;;  %v494_v38 = vrot.slane %v492_v17, 4  ;;  %v495_v1 = vshll.u32 %v6698_v53, 16  ;;  %v501_v30 = vshll.u32 %v6705_v16, 16  ;;  %v6737_v22 = vld [vmem:[%s8181_s1 + $0xe] sm:$0x3] }
  0x65   : > { %v484_v25 = vor.u32 %v483_v7, %v479_v58  ;;  %v5228_v31 = vcombine.low %v2810_v21, %v2813_v5  ;;  %5645 = vmatprep.mubr.msk.bf16.mxu1 %vm685_vm3, %v4943_v11  ;;  %v480_v28 = vsel %vm6446_vm4, %v475_v14, %v479_v58  ;;  %v505_v60 = vshrl.u32 %v6705_v16, 16  ;;  %v6756_v5 = vld [vmem:[%s6420_s27 + $0x90] sm:$0xf] }
  0x66   : > { %v511_v42 = vshll.u32 %v242_v57, 16  ;;  %v497_v45 = vrot.slane %v495_v1, 5  ;;  %v5212_v47 = vrot.slane %v5196_v10, 9  ;;  %v2816_v26 = vrot.slane %v6496_v46, 5  ;;  %v5197_v57 = vld [vmem:[%s6420_s27 + $0x30] sm:$0xe] }
  0x67   : > { %v485_v44 = vrot.slane %v484_v25, 4  ;;  %v503_v48 = vrot.slane %v501_v30, 5  ;;  %v507_v49 = vrot.slane %v505_v60, 4  ;;  %v2819_v51 = vrot.slane %v6505_v54, 5  ;;  %v6768_v30 = vld [vmem:[%s6420_s27 + $0x94] sm:$0xf] }
  0x68   : > { %v513_v50 = vrot.slane %v511_v42, 5  ;;  %5800 = vmatmul.mubr.msk.bf16.vlgmr.msra.gmra.mrb[0].mxu0 %vm685_vm3, %v5228_v31  ;;  %v498_v62 = vor.u32 %v497_v45, %v494_v38  ;;  %v2817_v55 = vsel %vm6672_vm7, %v5212_v47, %v2816_v26  ;;  %v2818_v56 = vrot.slane %v2816_v26, 4  ;;  %v244_v60 = vld [vmem:[%s6420_s27 + $0x98] sm:$0x1]  ;;  %v5198_v26 = vld [vmem:[%s6420_s27 + $0x3c] sm:$0xe] }
  0x69   : > { %v490_v15 = vsel %vm6446_vm4, %v485_v44, %v489_v18  ;;  %5832 = vmatpush3.bf16.msra.mxu0 %v6456_v41  ;;  %v508_v46 = vor.u32 %v507_v49, %v503_v48  ;;  %v516_v58 = vshrl.u32 %v6724_v39, 16  ;;  %v519_v54 = vshll.u32 %v6724_v39, 16 }
  0x6a   : > { %v4944_v63 = vcombine.low %v480_v28, %v490_v15  ;;  %v499_v61 = vrot.slane %v498_v62, 4  ;;  %v2820_v2 = vsel %vm6672_vm7, %v2818_v56, %v2819_v51  ;;  %v525_v6 = vshll.u32 %v6732_v43, 16  ;;  %6199 = vmatprep.subr.msk.bf16.mxu0 %vm734_vm0, %v6737_v22 }
  0x6b   : > { %v529_v7 = vshrl.u32 %v6732_v43, 16  ;;  %v509_v41 = vrot.slane %v508_v46, 4  ;;  %v5229_v17 = vcombine.low %v2817_v55, %v2820_v2  ;;  %v518_v10 = vrot.slane %v516_v58, 4  ;;  %v6788_v46 = vld [vmem:[%s6420_s27 + $0xa0] sm:$0xf] }
  0x6c   : > { %5646 = vmatmul.mubr.msk.bf16.gmra.mrb[16].mxu1 %vm685_vm3, %v4944_v63  ;;  %v521_v11 = vrot.slane %v519_v54, 5  ;;  %v504_v14 = vsel %vm6446_vm4, %v499_v61, %v503_v48  ;;  %v527_v18 = vrot.slane %v525_v6, 5  ;;  %v535_v25 = vshll.u32 %v243_v52, 16  ;;  %v6777_v52 = vld [vmem:[%s6420_s27 + $0x9c] sm:$0xf] }
  0x6d   : > { %v531_v21 = vrot.slane %v529_v7, 4  ;;  %v514_v31 = vsel %vm6446_vm4, %v509_v41, %v513_v50  ;;  %5803 = vmatprep.mubr.msk.bf16.mxu0 %vm685_vm3, %v5229_v17  ;;  %v5213_v1 = vrot.slane %v5197_v57, 9  ;;  %v2823_v28 = vrot.slane %v6525_v33, 5 }
  0x6e   : > { %v522_v38 = vor.u32 %v521_v11, %v518_v10  ;;  %v4945_v42 = vcombine.low %v504_v14, %v514_v31  ;;  %v537_v45 = vrot.slane %v535_v25, 5  ;;  %v2826_v47 = vrot.slane %v6533_v40, 5  ;;  %v245_v10 = vld [vmem:[%s6420_s27 + $0xa4] sm:$0x1]  ;;  %v5199_v11 = vld [vmem:[%s6420_s27 + $0x48] sm:$0xe] }
  0x6f   : > { %v532_v44 = vor.u32 %v531_v21, %v527_v18  ;;  %v2824_v49 = vsel %vm6672_vm7, %v5213_v1, %v2823_v28  ;;  %v2825_v50 = vrot.slane %v2823_v28, 4  ;;  %v540_v51 = vshrl.u32 %v6756_v5, 16 }
  0x70   : > { %v523_v48 = vrot.slane %v522_v38, 4  ;;  %5649 = vmatprep.mubr.msk.bf16.mxu1 %vm685_vm3, %v4945_v42  ;;  %v543_v15 = vshll.u32 %v6756_v5, 16  ;;  %v549_v62 = vshll.u32 %v6768_v30, 16  ;;  %v553_v40 = vshrl.u32 %v6768_v30, 16 }
  0x71   : > { %v533_v33 = vrot.slane %v532_v44, 4  ;;  %v2827_v56 = vsel %vm6672_vm7, %v2825_v50, %v2826_v47  ;;  %v542_v57 = vrot.slane %v540_v51, 4  ;;  %v559_v63 = vshll.u32 %v244_v60, 16 }
  0x72   : > { %v528_v55 = vsel %vm6446_vm4, %v523_v48, %v527_v18  ;;  %v5230_v54 = vcombine.low %v2824_v49, %v2827_v56  ;;  %v545_v61 = vrot.slane %v543_v15, 5  ;;  %v551_v2 = vrot.slane %v549_v62, 5  ;;  %v6814_v56 = vld [vmem:[%s6420_s27 + $0xac] sm:$0xf] }
  0x73   : > { %v538_v58 = vsel %vm6446_vm4, %v533_v33, %v537_v45  ;;  %v555_v7 = vrot.slane %v553_v40, 4  ;;  %v561_v41 = vrot.slane %v559_v63, 5  ;;  %v5214_v17 = vrot.slane %v5198_v26, 9  ;;  %v6809_v33 = vld [vmem:[%s6420_s27 + $0xa8] sm:$0xf] }
  0x74   : > { %v4946_v6 = vcombine.low %v528_v55, %v538_v58  ;;  %5804 = vmatmul.mubr.msk.bf16.gmra.mrb[4].mxu0 %vm685_vm3, %v5230_v54  ;;  %v546_v14 = vor.u32 %v545_v61, %v542_v57  ;;  %v2830_v18 = vrot.slane %v6550_v20, 5  ;;  %v2833_v21 = vrot.slane %v6555_v34, 5  ;;  %v246_v61 = vld [vmem:[%s6420_s27 + $0xb0] sm:$0x1] }
  0x75   : > { %v564_v25 = vshrl.u32 %v6777_v52, 16  ;;  %v556_v31 = vor.u32 %v555_v7, %v551_v2  ;;  %v567_v38 = vshll.u32 %v6777_v52, 16  ;;  %v573_v1 = vshll.u32 %v6788_v46, 16 }
  0x76   : > { %5650 = vmatmul.mubr.msk.bf16.gmra.mrb[20].mxu1 %vm685_vm3, %v4946_v6  ;;  %v577_v28 = vshrl.u32 %v6788_v46, 16  ;;  %v547_v60 = vrot.slane %v546_v14, 4  ;;  %v2831_v42 = vsel %vm6672_vm7, %v5214_v17, %v2830_v18  ;;  %v2832_v20 = vrot.slane %v2830_v18, 4  ;;  %v6829_v14 = vld [vmem:[%s6420_s27 + $0xb4] sm:$0xf] }
  0x77   : > { %v566_v44 = vrot.slane %v564_v25, 4  ;;  %v557_v34 = vrot.slane %v556_v31, 4  ;;  %v569_v45 = vrot.slane %v567_v38, 5  ;;  %v575_v47 = vrot.slane %v573_v1, 5 }
  0x78   : > { %v579_v26 = vrot.slane %v577_v28, 4  ;;  %v552_v48 = vsel %vm6446_vm4, %v547_v60, %v551_v2  ;;  %v2834_v49 = vsel %vm6672_vm7, %v2832_v20, %v2833_v21  ;;  %v583_v50 = vshll.u32 %v245_v10, 16  ;;  %v5200_v2 = vld [vmem:[%s6420_s27 + $0x54] sm:$0xe] }
  0x79   : > { %v5215_v51 = vrot.slane %v5199_v11, 9  ;;  %v562_v15 = vsel %vm6446_vm4, %v557_v34, %v561_v41  ;;  %v5231_v62 = vcombine.low %v2831_v42, %v2834_v49  ;;  %v570_v40 = vor.u32 %v569_v45, %v566_v44  ;;  %v6838_v42 = vld [vmem:[%s6420_s27 + $0xb8] sm:$0xf]  ;;  %v247_v49 = vld [vmem:[%s6420_s27 + $0xbc] sm:$0x1] }
  0x7a   : > { %v580_v55 = vor.u32 %v579_v26, %v575_v47  ;;  %v4947_v57 = vcombine.low %v552_v48, %v562_v15  ;;  %v585_v63 = vrot.slane %v583_v50, 5  ;;  %v2837_v58 = vrot.slane %v6573_v8, 5 }
  0x7b   : > { %v2840_v54 = vrot.slane %v6581_v23, 5  ;;  %5807 = vmatprep.mubr.msk.bf16.mxu0 %vm685_vm3, %v5231_v62  ;;  %v571_v6 = vrot.slane %v570_v40, 4  ;;  %v588_v41 = vshrl.u32 %v6809_v33, 16  ;;  %v591_v17 = vshll.u32 %v6809_v33, 16 }
  0x7c   : > { %v581_v7 = vrot.slane %v580_v55, 4  ;;  %5653 = vmatprep.mubr.msk.bf16.mxu1 %vm685_vm3, %v4947_v57  ;;  %v2838_v10 = vsel %vm6672_vm7, %v5215_v51, %v2837_v58  ;;  %v2839_v11 = vrot.slane %v2837_v58, 4  ;;  %v597_v8 = vshll.u32 %v6814_v56, 16  ;;  %v5201_v55 = vld [vmem:[%s6420_s27 + $0x60] sm:$0xe] }
  0x7d   : > { %v601_v23 = vshrl.u32 %v6814_v56, 16  ;;  %v576_v18 = vsel %vm6446_vm4, %v571_v6, %v575_v47  ;;  %v590_v25 = vrot.slane %v588_v41, 4  ;;  %v593_v31 = vrot.slane %v591_v17, 5  ;;  %v5202_v6 = vld [vmem:[%s6420_s27 + $0x6c] sm:$0xe] }
  0x7e   : > { %v586_v21 = vsel %vm6446_vm4, %v581_v7, %v585_v63  ;;  %v2841_v1 = vsel %vm6672_vm7, %v2839_v11, %v2840_v54  ;;  %v599_v28 = vrot.slane %v597_v8, 5  ;;  %v607_v34 = vshll.u32 %v246_v61, 16  ;;  %v5138_v11 = vld [vmem:[%s6420_s27 + $0x70] sm:$0xf]  ;;  %v5139_v8 = vld [vmem:[%s6420_s27 + $0x74] sm:$0x1] }
  0x7f   : > { %v4948_v38 = vcombine.low %v576_v18, %v586_v21  ;;  %v603_v60 = vrot.slane %v601_v23, 4  ;;  %v5232_v20 = vcombine.low %v2838_v10, %v2841_v1  ;;  %v594_v44 = vor.u32 %v593_v31, %v590_v25 }
  0x80   : > { %v5216_v45 = vrot.slane %v5200_v2, 9  ;;  %v2844_v26 = vrot.slane %v6604_v4, 5  ;;  %v2847_v48 = vrot.slane %v6610_v12, 5  ;;  %v612_v50 = vshrl.u32 %v6829_v14, 16 }
  0x81   : > { %5654 = vmatmul.mubr.msk.bf16.gmra.mrb[24].mxu1 %vm685_vm3, %v4948_v38  ;;  %v604_v47 = vor.u32 %v603_v60, %v599_v28  ;;  %5808 = vmatmul.mubr.msk.bf16.gmra.mrb[8].mxu0 %vm685_vm3, %v5232_v20  ;;  %v595_v51 = vrot.slane %v594_v44, 4  ;;  %v609_v15 = vrot.slane %v607_v34, 5  ;;  %v615_v62 = vshll.u32 %v6829_v14, 16 }
  0x82   : > { %v621_v40 = vshll.u32 %v6838_v42, 16  ;;  %v2845_v4 = vsel %vm6672_vm7, %v5216_v45, %v2844_v26  ;;  %v2846_v12 = vrot.slane %v2844_v26, 4  ;;  %v614_v63 = vrot.slane %v612_v50, 4 }
  0x83   : > { %v605_v57 = vrot.slane %v604_v47, 4  ;;  %v600_v58 = vsel %vm6446_vm4, %v595_v51, %v599_v28  ;;  %v617_v54 = vrot.slane %v615_v62, 5  ;;  %v625_v2 = vshrl.u32 %v6838_v42, 16  ;;  %v5203_v47 = vld [vmem:[%s6420_s27 + $0x78] sm:$0xe] }
  0x84   : > { %v623_v61 = vrot.slane %v621_v40, 5  ;;  %v2848_v41 = vsel %vm6672_vm7, %v2846_v12, %v2847_v48  ;;  %v631_v17 = vshll.u32 %v247_v49, 16  ;;  %v5217_v10 = vrot.slane %v5201_v55, 9  ;;  %v6274_v51 = vld [vmem:[%s6420_s27] sm:$0xf] }
  0x85   : > { %v610_v7 = vsel %vm6446_vm4, %v605_v57, %v609_v15  ;;  %v5233_v18 = vcombine.low %v2845_v4, %v2848_v41  ;;  %v618_v21 = vor.u32 %v617_v54, %v614_v63  ;;  %v627_v25 = vrot.slane %v625_v2, 4  ;;  %v6876_v15 = vld [vmem:[%s6420_s27 + $0x4] sm:$0xf]  ;;  %v6880_v40 = vld [vmem:[%s6420_s27 + $0x7c] sm:$0xf] }
  0x86   : > { %v4949_v23 = vcombine.low %v600_v58, %v610_v7  ;;  %v633_v31 = vrot.slane %v631_v17, 5  ;;  %v2851_v38 = vrot.slane %v6634_v59, 5  ;;  %v2854_v1 = vrot.slane %v6641_v9, 5  ;;  %v6883_v55 = vld [vmem:[%s6420_s27 + $0x80] sm:$0x1] }
  0x87   : > { %v5218_v28 = vrot.slane %v5202_v6, 9  ;;  %5811 = vmatprep.mubr.msk.bf16.mxu0 %vm685_vm3, %v5233_v18  ;;  %v619_v60 = vrot.slane %v618_v21, 4  ;;  %v628_v20 = vor.u32 %v627_v25, %v623_v61  ;;  %v2858_v44 = vrot.slane %v5138_v11, 5  ;;  %v5144_v57 = vld [vmem:[%s6420_s27 + $0x88] sm:$0xf] }
  0x88   : > { %5657 = vmatprep.mubr.msk.bf16.mxu1 %vm685_vm3, %v4949_v23  ;;  %v2861_v34 = vrot.slane %v5139_v8, 5  ;;  %v2852_v45 = vsel %vm6672_vm7, %v5217_v10, %v2851_v38  ;;  %v2853_v59 = vrot.slane %v2851_v38, 4  ;;  %v4967_v62 = vcombine.low %v6274_v51, %v6876_v15  ;;  %v5145_v54 = vld [vmem:[%s6420_s27 + $0x8c] sm:$0x1]  ;;  %v5147_v17 = vld [vmem:[%s6420_s27 + $0x94] sm:$0xf] }
  0x89   : > { %v624_v9 = vsel %vm6446_vm4, %v619_v60, %v623_v61  ;;  %v629_v26 = vrot.slane %v628_v20, 4  ;;  %v2859_v48 = vsel %vm6672_vm7, %v5218_v28, %v2858_v44  ;;  %v2860_v49 = vrot.slane %v2858_v44, 4  ;;  %v5204_v61 = vld [vmem:[%s6420_s27 + $0x84] sm:$0xe]  ;;  %v5205_v23 = vld [vmem:[%s6420_s27 + $0x90] sm:$0xe] }
  0x8a   : > { %v2855_v50 = vsel %vm6672_vm7, %v2853_v59, %v2854_v1  ;;  %v5219_v58 = vrot.slane %v5203_v47, 9  ;;  %v2865_v7 = vrot.slane %v6880_v40, 5  ;;  %v2868_v41 = vrot.slane %v6883_v55, 5  ;;  %v5148_v25 = vld [vmem:[%s6420_s27 + $0x98] sm:$0x1] }
  0x8b   : > { %v634_v4 = vsel %vm6446_vm4, %v629_v26, %v633_v31  ;;  %v5234_v12 = vcombine.low %v2852_v45, %v2855_v50  ;;  %v2862_v63 = vsel %vm6672_vm7, %v2860_v49, %v2861_v34  ;;  %v5220_v10 = vrot.slane %v5204_v61, 9  ;;  %v5150_v31 = vld [vmem:[%s6420_s27 + $0xa0] sm:$0xf]  ;;  %v5151_v60 = vld [vmem:[%s6420_s27 + $0xa4] sm:$0x1] }
  0x8c   : > { %v4950_v2 = vcombine.low %v624_v9, %v634_v4  ;;  %v5235_v6 = vcombine.low %v2859_v48, %v2862_v63  ;;  %v2872_v11 = vrot.slane %v5144_v57, 5  ;;  %v2875_v8 = vrot.slane %v5145_v54, 5  ;;  %v5206_v20 = vld [vmem:[%s6420_s27 + $0x9c] sm:$0xe]  ;;  %v6276_v44 = vld [vmem:[%s6420_s27 + $0xc] sm:$0xf] }
  0x8d   : > { %5812 = vmatmul.mubr.msk.bf16.gmra.mrb[12].mxu0 %vm685_vm3, %v5234_v12  ;;  %v2866_v18 = vsel %vm6672_vm7, %v5219_v58, %v2865_v7  ;;  %v2867_v21 = vrot.slane %v2865_v7, 4  ;;  %v2879_v28 = vrot.slane %v5147_v17, 5  ;;  %v6910_v34 = vld [vmem:[%s6420_s27 + $0x10] sm:$0xf]  ;;  %v6278_v47 = vld [vmem:[%s6420_s27 + $0x18] sm:$0xf] }
  0x8e   : > { %5658 = vmatmul.mubr.msk.bf16.gmra.mrb[28].mxu1 %vm685_vm3, %v4950_v2  ;;  %5815 = vmatprep.mubr.msk.bf16.mxu0 %vm685_vm3, %v5235_v6  ;;  %v2873_v38 = vsel %vm6672_vm7, %v5220_v10, %v2872_v11  ;;  %v2874_v1 = vrot.slane %v2872_v11, 4  ;;  %v4968_v45 = vcombine.low %v6276_v44, %v6910_v34  ;;  %v6917_v9 = vld [vmem:[%s6420_s27 + $0x1c] sm:$0xf]  ;;  %v5221_v48 = vrot.slane %v5205_v23, 9  ;;  %v5153_v57 = vld [vmem:[%s6420_s27 + $0xac] sm:$0xf] }
  0x8f   : > { %5663 = vmatprep.mubr.msk.bf16.mxu1 %vm685_vm3, %v4967_v62  ;;  %v2869_v59 = vsel %vm6672_vm7, %v2867_v21, %v2868_v41  ;;  %v4969_v26 = vcombine.low %v6278_v47, %v6917_v9  ;;  %v2881_v51 = vrot.slane %v2879_v28, 4  ;;  %v2882_v62 = vrot.slane %v5148_v25, 5  ;;  %v6280_v54 = vld [vmem:[%s8181_s1 + $0x4] sm:$0x3]  ;;  %v5156_v2 = vld [vmem:[%s6420_s27 + $0xb8] sm:$0xf] }
  0x90   : > { %v5236_v49 = vcombine.low %v2866_v18, %v2869_v59  ;;  %v2876_v50 = vsel %vm6672_vm7, %v2874_v1, %v2875_v8  ;;  %v5222_v12 = vrot.slane %v5206_v20, 9  ;;  %v2886_v63 = vrot.slane %v5150_v31, 5  ;;  %v6932_v7 = vld [vmem:[%s8181_s1 + $0x6] sm:$0x3]  ;;  %v5154_v10 = vld [vmem:[%s6420_s27 + $0xb0] sm:$0x1] }
  0x91   : > { %v5237_v4 = vcombine.low %v2873_v38, %v2876_v50  ;;  %v2889_v58 = vrot.slane %v5151_v60, 5  ;;  %v1453_v61 = vsel %vm734_vm0, %v6280_v54, 0  ;;  %v2880_v41 = vsel %vm6672_vm7, %v5221_v48, %v2879_v28  ;;  %v5207_v11 = vld [vmem:[%s6420_s27 + $0xa8] sm:$0xe]  ;;  %v5157_v25 = vld [vmem:[%s6420_s27 + $0xbc] sm:$0x1] }
  0x92   : > { %v2888_v6 = vrot.slane %v2886_v63, 4  ;;  %v2883_v17 = vsel %vm6672_vm7, %v2881_v51, %v2882_v62  ;;  %v2893_v8 = vrot.slane %v5153_v57, 5  ;;  %v2887_v23 = vsel %vm6672_vm7, %v5222_v12, %v2886_v63  ;;  %v5208_v31 = vld [vmem:[%s6420_s27 + $0xb4] sm:$0xe]  ;;  %v6281_v38 = vld [vmem:[%s6420_s27 + $0x24] sm:$0xf] }
  0x93   : > { %v2900_v21 = vrot.slane %v5156_v2, 5  ;;  %v6953_v1 = vld [vmem:[%s6420_s27 + $0x28] sm:$0xf]  ;;  %v5238_v60 = vcombine.low %v2880_v41, %v2883_v17  ;;  %v5223_v44 = vrot.slane %v5207_v11, 9  ;;  %v2896_v59 = vrot.slane %v5154_v10, 5 }
  0x94   : > { %v2890_v18 = vsel %vm6672_vm7, %v2888_v6, %v2889_v58  ;;  %v4970_v28 = vcombine.low %v6281_v38, %v6953_v1  ;;  %v6283_v47 = vld [vmem:[%s6420_s27 + $0x30] sm:$0xf]  ;;  %v2903_v51 = vrot.slane %v5157_v25, 5  ;;  %v5159_v62 = vld [vmem:[%s6420_s27 + $0xc4] sm:$0xf]  ;;  %v2288_v25 = vshrl.u32 %v6880_v40, 16 }
  0x95   : > { %5816 = vmatmul.mubr.msk.bf16.gmra.mrb[16].mxu0 %vm685_vm3, %v5236_v49  ;;  %v5239_v20 = vcombine.low %v2887_v23, %v2890_v18  ;;  %v5224_v49 = vrot.slane %v5208_v31, 9  ;;  %v2902_v50 = vrot.slane %v2900_v21, 4  ;;  %v2894_v57 = vsel %vm6672_vm7, %v5223_v44, %v2893_v8  ;;  %v5209_v12 = vld [vmem:[%s6420_s27 + $0xc0] sm:$0xe]  ;;  %v6285_v41 = vld [vmem:[%s6420_s27 + $0x3c] sm:$0xf] }
  0x96   : > { %5664 = vmatmul.mubr.msk.bf16.vlgmr.msra.gmra.mrb[0].mxu1 %vm685_vm3, %v4968_v45  ;;  %5819 = vmatprep.mubr.msk.bf16.mxu0 %vm685_vm3, %v5237_v4  ;;  %v2895_v45 = vrot.slane %v2893_v8, 4  ;;  %v2907_v63 = vrot.slane %v5159_v62, 5  ;;  %v5225_v6 = vrot.slane %v5209_v12, 9  ;;  %v6978_v17 = vld [vmem:[%s6420_s27 + $0x40] sm:$0xf]  ;;  %v4973_v18 = vcombine.low %v6585_v27, %v6588_v36  ;;  %v6237_v62 = vld [vmem:[%s6420_s27 + $0x24] sm:$0xff]  }
  0x97   : > { %5696 = vmatpush3.bf16.msra.mxu1 %v1453_v61  ;;  %5667 = vmatprep.mubr.msk.bf16.mxu1 %vm685_vm3, %v4969_v26  ;;  %v6958_v26 = vld [vmem:[%s6420_s27 + $0x34] sm:$0xf]  ;;  %v2901_v58 = vsel %vm6672_vm7, %v5224_v49, %v2900_v21  ;;  %v2904_v54 = vsel %vm6672_vm7, %v2902_v50, %v2903_v51  ;;  %v5160_v61 = vld [vmem:[%s6420_s27 + $0xc8] sm:$0x1]  ;;  %v4972_v10 = vcombine.low %v6285_v41, %v6978_v17  ;;  %v2284_v21 = vshll.u32 %v6880_v40, 16 }
  0x98   : > { %6194 = vmatprep.subr.msk.bf16.mxu1 %vm734_vm0, %v6932_v7  ;;  %v4971_v48 = vcombine.low %v6283_v47, %v6958_v26  ;;  %v2897_v4 = vsel %vm6672_vm7, %v2895_v45, %v2896_v59  ;;  %v5241_v11 = vcombine.low %v2901_v58, %v2904_v54  ;;  %v2909_v8 = vrot.slane %v2907_v63, 4  ;;  %v1191_v45 = vld [vmem:[%s6420_s27] sm:$0xe]  ;;  %v1192_v59 = vld [vmem:[%s6420_s27 + $0xc] sm:$0xe] }
  0x99   : > { %v5240_v2 = vcombine.low %v2894_v57, %v2897_v4  ;;  %v2910_v23 = vrot.slane %v5160_v61, 5  ;;  %v2908_v31 = vsel %vm6672_vm7, %v5225_v6, %v2907_v63  ;;  %v6993_v27 = vrot.slane %v2284_v21, 5  ;;  %v1195_v41 = vld [vmem:[%s6420_s27 + $0x30] sm:$0xe] }
  0x9a   : > { %v2290_v36 = vrot.slane %v2288_v25, 4  ;;  %v4975_v44 = vcombine.low %v6645_v19, %v6651_v35  ;;  %v2294_v47 = vshll.u32 %v6883_v55, 16  ;;  %v4999_v19 = vrot.slane %v1191_v45, 9 }
  0x9b   : > { %v2911_v38 = vsel %vm6672_vm7, %v2909_v8, %v2910_v23  ;;  %8202 = vst [vmem:[#allocation3_spill] sm:$0xff] %v6993_v27  ;;  %v5000_v35 = vrot.slane %v1192_v59, 9  ;;  %v1258_v4 = vrot.slane %v6917_v9, 5  ;;  %v1265_v12 = vrot.slane %v6953_v1, 5  ;;  %v1196_v8 = vld [vmem:[%s6420_s27 + $0x3c] sm:$0xe] }
  0x9c   : > { %v5242_v40 = vcombine.low %v2908_v31, %v2911_v38  ;;  %v2291_v49 = vor.u32 %v2290_v36, %v6993_v27  ;;  %v7013_v51 = vrot.slane %v2294_v47, 5  ;;  %v4976_v58 = vcombine.low %v6666_v0, %v6679_v29  ;;  %v1197_v31 = vld [vmem:[%s6420_s27 + $0x48] sm:$0xe]  ;;  %v6291_v59 = vld [vmem:[%s6420_s27 + $0x38] sm:$0x1] }
  0x9d   : > { %5820 = vmatmul.mubr.msk.bf16.gmra.mrb[20].mxu0 %vm685_vm3, %v5238_v60  ;;  %v4974_v60 = vcombine.low %v6614_v24, %v6620_v37  ;;  %v6288_v24 = vld [vmem:[%s6420_s27 + $0x14] sm:$0x1]  ;;  %v4099_v54 = vsel %vm734_vm0, %v6737_v22, 0  ;;  %v4977_v61 = vcombine.low %v6698_v53, %v6705_v16  ;;  %v4978_v6 = vcombine.low %v6724_v39, %v6732_v43  ;;  %v6289_v16 = vld [vmem:[%s6420_s27 + $0x20] sm:$0x1] }
  0x9e   : > { %5668 = vmatmul.mubr.msk.bf16.gmra.mrb[4].mxu1 %vm685_vm3, %v4970_v28  ;;  %5823 = vmatprep.mubr.msk.bf16.mxu0 %vm685_vm3, %v5239_v20  ;;  %v1251_v28 = vrot.slane %v6910_v34, 5  ;;  %v6235_v20 = vld [vmem:[%s6420_s27 + $0x18] sm:$0xff]   ;;  %v6287_v34 = vld [vmem:[%s6420_s27 + $0x8] sm:$0x1]  ;;  %v1254_v37 = vrot.slane %v6288_v24, 5  ;;  %8203 = vst [vmem:[#allocation4_spill] sm:$0xff] %v7013_v51  ;;  %v4979_v9 = vcombine.low %v6756_v5, %v6768_v30 }
  0x9f   : > { %5671 = vmatprep.mubr.msk.bf16.mxu1 %vm685_vm3, %v4971_v48  ;;  %v1244_v48 = vrot.slane %v6876_v15, 5  ;;  %v1247_v50 = vrot.slane %v6287_v34, 5  ;;  %v1193_v15 = vld [vmem:[%s6420_s27 + $0x18] sm:$0xe]  ;;  %v7018_v63 = vrot.slane %v2291_v49, 4  ;;  %v1261_v22 = vrot.slane %v6289_v16, 5 }
  0xa0   : > { %v1253_v55 = vrot.slane %v1251_v28, 4  ;;  %v5001_v1 = vrot.slane %v1193_v15, 9  ;;  %v7040_v29 = vsel %vm6672_vm7, %v5000_v35, %v1251_v28  ;;  %v1267_v25 = vrot.slane %v1265_v12, 4  ;;  %v5324_v24 = vld [vmem:[%s6420_s27 + $0x18] sm:$0xf] }
  0xa1   : > { %v1246_v57 = vrot.slane %v1244_v48, 4  ;;  %8204 = vst [vmem:[#allocation5_spill] sm:$0xff] %v7018_v63  ;;  %v7036_v0 = vsel %vm6672_vm7, %v4999_v19, %v1244_v48  ;;  %v1275_v47 = vrot.slane %v6291_v59, 5  ;;  %v7077_v49 = vsel %vm734_vm0, %v6932_v7, 0  ;;  %v5325_v7 = vld [vmem:[%s6420_s27 + $0x1c] sm:$0xf] }
  0xa2   : > { %v7044_v53 = vsel %vm6672_vm7, %v1253_v55, %v1254_v37  ;;  %v7081_v34 = vsel %vm6672_vm7, %v5001_v1, %v1258_v4  ;;  %v6241_v37 = vld [vmem:[%s6420_s27 + $0x3c] sm:$0xff]   ;;  %v5004_v35 = vrot.slane %v1196_v8, 9  ;;  %v6292_v55 = vld [vmem:[%s6420_s27 + $0x44] sm:$0x1]  ;;  %v3620_v8 = vshll.u32 %v5324_v24, 16 }
  0xa3   : > { %v7055_v23 = vsel %vm6672_vm7, %v1246_v57, %v1247_v50  ;;  %v1198_v50 = vld [vmem:[%s6420_s27 + $0x54] sm:$0xe]  ;;  %v1282_v15 = vrot.slane %v6292_v55, 5  ;;  %v5328_v39 = vld [vmem:[%s6420_s27 + $0x28] sm:$0xf] }
  0xa4   : > { %v6299_v5 = vld [vmem:[%s6420_s27 + $0x70] sm:$0xf] }
  0xa5   : > { %5824 = vmatmul.mubr.msk.bf16.gmra.mrb[24].mxu0 %vm685_vm3, %v5240_v2  ;;  %v1194_v2 = vld [vmem:[%s6420_s27 + $0x24] sm:$0xe]  ;;  %v1307_v30 = vrot.slane %v6299_v5, 5 }
  0xa6   : > { %5672 = vmatmul.mubr.msk.bf16.gmra.mrb[8].mxu1 %vm685_vm3, %v4972_v10  ;;  %5827 = vmatprep.mubr.msk.bf16.mxu0 %vm685_vm3, %v5241_v11  ;;  %v1272_v10 = vrot.slane %v6958_v26, 5  ;;  %v6239_v11 = vld [vmem:[%s6420_s27 + $0x30] sm:$0xff]   ;;  %v5002_v21 = vrot.slane %v1194_v2, 9 }
  0xa7   : > { %5675 = vmatprep.mubr.msk.bf16.mxu1 %vm685_vm3, %v4973_v18  ;;  %v7051_v26 = vld [vmem:[%s8181_s1 + $0x10] sm:$0x3]  ;;  %v1260_v18 = vrot.slane %v1258_v4, 4  ;;  %v1309_v48 = vrot.slane %v1307_v30, 4 }
  0xa8   : > { %v1274_v45 = vrot.slane %v1272_v10, 4  ;;  %v7088_v19 = vsel %vm6672_vm7, %v5002_v21, %v1265_v12  ;;  %v3630_v21 = vshrl.u32 %v5325_v7, 16 }
  0xa9   : > { %v7097_v4 = vsel %vm6672_vm7, %v1260_v18, %v1261_v22  ;;  %v3617_v22 = vshrl.u32 %v5324_v24, 16  ;;  %v3626_v18 = vshll.u32 %v5325_v7, 16  ;;  %v5327_v24 = vld [vmem:[%s6420_s27 + $0x24] sm:$0xf] }
  0xaa   : > { %v7110_v1 = vsel %vm6672_vm7, %v1274_v45, %v1275_v47 }
  0xab   : > { %v3619_v43 = vrot.slane %v3617_v22, 4  ;;  %v7152_v7 = vrot.slane %v3626_v18, 5  ;;  %v3644_v22 = vshll.u32 %v5327_v24, 16  ;;  %v3654_v18 = vshrl.u32 %v5328_v39, 16 }
  0xad   : > { %5828 = vmatmul.mubr.msk.bf16.gmra.mrb[28].mxu0 %vm685_vm3, %v5242_v40  ;;  %v6290_v40 = vld [vmem:[%s6420_s27 + $0x2c] sm:$0x1]  ;;  %v3646_v27 = vrot.slane %v3644_v22, 5 }
  0xae   : > { %5676 = vmatmul.mubr.msk.bf16.gmra.mrb[12].mxu1 %vm685_vm3, %v4974_v60  ;;  %5833 = vmatprep.mubr.msk.bf16.mxu0 %vm685_vm3, %v6235_v20  ;;  %v1268_v28 = vrot.slane %v6290_v40, 5  ;;  %v1279_v60 = vrot.slane %v6978_v17, 5  ;;  %v6295_v40 = vld [vmem:[%s6420_s27 + $0x50] sm:$0x1]  ;;  %v6300_v17 = vld [vmem:[%s6420_s27 + $0x74] sm:$0x1] }
  0xaf   : > { %5679 = vmatprep.mubr.msk.bf16.mxu1 %vm685_vm3, %v4975_v44  ;;  %v5003_v44 = vrot.slane %v1195_v41, 9  ;;  %v5006_v41 = vrot.slane %v1198_v50, 9  ;;  %v1199_v50 = vld [vmem:[%s6420_s27 + $0x60] sm:$0xe]  ;;  %v5329_v20 = vld [vmem:[%s6420_s27 + $0x2c] sm:$0x1] }
  0xb0   : > { %v1281_v12 = vrot.slane %v1279_v60, 4  ;;  %v7123_v45 = vsel %vm6672_vm7, %v5004_v35, %v1279_v60  ;;  %v6296_v35 = vld [vmem:[%s6420_s27 + $0x5c] sm:$0x1] }
  0xb1   : > { %v7106_v2 = vsel %vm6672_vm7, %v5003_v44, %v1272_v10  ;;  %v1296_v55 = vrot.slane %v6296_v35, 5  ;;  %v1200_v35 = vld [vmem:[%s6420_s27 + $0x6c] sm:$0xe] }
  0xb2   : > { %v7127_v59 = vsel %vm6672_vm7, %v1281_v12, %v1282_v15  ;;  %v6297_v15 = vld [vmem:[%s6420_s27 + $0x64] sm:$0xf]  ;;  %v3632_v12 = vrot.slane %v3630_v21, 4  ;;  %v5008_v5 = vrot.slane %v1200_v35, 9 }
  0xb3   : > { %v6247_v21 = vld [vmem:[%s6420_s27 + $0x60] sm:$0xff]  }
  0xb5   : > { %5834 = vmatmul.mubr.msk.bf16.vlgmr.msra.gmra.mrb[0].mxu0 %vm685_vm3, %v6237_v62  ;;  %v6293_v62 = vld [vmem:[%s6420_s27 + $0x4c] sm:$0xf] }
  0xb6   : > { %5680 = vmatmul.mubr.msk.bf16.gmra.mrb[16].mxu1 %vm685_vm3, %v4976_v58  ;;  %5866 = vmatpush3.bf16.msra.mxu0 %v4099_v54  ;;  %v1286_v57 = vrot.slane %v6293_v62, 5  ;;  %v7101_v58 = vsel %vm6672_vm7, %v1267_v25, %v1268_v28  ;;  %v5005_v54 = vrot.slane %v1197_v31, 9  ;;  %v1289_v28 = vrot.slane %v6295_v40, 5 }
  0xb7   : > { %5683 = vmatprep.mubr.msk.bf16.mxu1 %vm685_vm3, %v4977_v61  ;;  %5837 = vmatprep.mubr.msk.bf16.mxu0 %vm685_vm3, %v6239_v11  ;;  %v6243_v61 = vld [vmem:[%s6420_s27 + $0x48] sm:$0xff]   ;;  %v6294_v11 = vld [vmem:[%s6420_s27 + $0x58] sm:$0xf]  ;;  %v1300_v62 = vrot.slane %v6297_v15, 5  ;;  %v5331_v15 = vld [vmem:[%s6420_s27 + $0x34] sm:$0xf] }
  0xb8   : > { %6200 = vmatprep.subr.msk.bf16.mxu0 %vm734_vm0, %v7051_v26  ;;  %v1293_v16 = vrot.slane %v6294_v11, 5  ;;  %v1288_v31 = vrot.slane %v1286_v57, 4  ;;  %v7131_v47 = vsel %vm6672_vm7, %v5005_v54, %v1286_v57  ;;  %v5326_v57 = vld [vmem:[%s6420_s27 + $0x20] sm:$0x1]  ;;  %v5330_v54 = vld [vmem:[%s6420_s27 + $0x30] sm:$0xf] }
  0xb9   : > { %v5007_v11 = vrot.slane %v1199_v50, 9  ;;  %v3668_v50 = vshll.u32 %v5330_v54, 16  ;;  %v3636_v25 = vshll.u32 %v5326_v57, 16  ;;  %v3674_v36 = vshll.u32 %v5331_v15, 16 }
  0xba   : > { %v7142_v60 = vsel %vm6672_vm7, %v5006_v41, %v1293_v16  ;;  %v7158_v41 = vsel %vm6672_vm7, %v1288_v31, %v1289_v28  ;;  %v1302_v31 = vrot.slane %v1300_v62, 4  ;;  %v3665_v28 = vshrl.u32 %v5330_v54, 16 }
  0xbb   : > { %v7200_v35 = vrot.slane %v3674_v36, 5 }
  0xbd   : > { %5838 = vmatmul.mubr.msk.bf16.gmra.mrb[4].mxu0 %vm685_vm3, %v6241_v37  ;;  %v1295_v37 = vrot.slane %v1293_v16, 4  ;;  %v6298_v16 = vld [vmem:[%s6420_s27 + $0x68] sm:$0x1] }
  0xbe   : > { %5684 = vmatmul.mubr.msk.bf16.gmra.mrb[20].mxu1 %vm685_vm3, %v4978_v6  ;;  %5841 = vmatprep.mubr.msk.bf16.mxu0 %vm685_vm3, %v6243_v61  ;;  %v3622_v6 = vrot.slane %v3620_v8, 5  ;;  %v6245_v61 = vld [vmem:[%s6420_s27 + $0x54] sm:$0xff]   ;;  %v1303_v40 = vrot.slane %v6298_v16, 5  ;;  %v3650_v8 = vshll.u32 %v5328_v39, 16  ;;  %v3633_v16 = vor.u32 %v3632_v12, %v7152_v7 }
  0xbf   : > { %5687 = vmatprep.mubr.msk.bf16.mxu1 %vm685_vm3, %v4979_v9  ;;  %v3641_v9 = vshrl.u32 %v5327_v24, 16  ;;  %v7167_v44 = vsel %vm6672_vm7, %v1295_v37, %v1296_v55  ;;  %v1310_v24 = vrot.slane %v6300_v17, 5  ;;  %v3678_v39 = vshrl.u32 %v5331_v15, 16 }
  0xc0   : > { %v3623_v10 = vor.u32 %v3622_v6, %v3619_v43  ;;  %v7173_v37 = vrot.slane %v3650_v8, 5  ;;  %v3656_v55 = vrot.slane %v3654_v18, 4  ;;  %v8205_v43 = vcombine.low %v6777_v52, %v6788_v46  ;;  %v6301_v8 = vld [vmem:[%s6420_s27 + $0x7c] sm:$0xf]  ;;  %v7209_v18 = vld [vmem:[%s6420_s27 + $0x38] sm:$0x1] }
  0xc1   : > { %v3643_v38 = vrot.slane %v3641_v9, 4  ;;  %v7182_v17 = vsel %vm6672_vm7, %v5007_v11, %v1300_v62  ;;  %v7186_v57 = vsel %vm6672_vm7, %v1302_v31, %v1303_v40  ;;  %v3667_v6 = vrot.slane %v3665_v28, 4  ;;  %8207 = vst [vmem:[#allocation6_spill] sm:$0xff] %v7209_v18 }
  0xc2   : > { %v3670_v12 = vrot.slane %v3668_v50, 5  ;;  %v8206_v52 = vcombine.low %v6809_v33, %v6814_v56  ;;  %v3624_v46 = vrot.slane %v3623_v10, 4  ;;  %v3634_v54 = vrot.slane %v3633_v16, 4  ;;  %v6249_v33 = vld [vmem:[%s6420_s27 + $0x6c] sm:$0xff]   ;;  %v1202_v16 = vld [vmem:[%s6420_s27 + $0x84] sm:$0xe] }
  0xc3   : > { %v3660_v62 = vshll.u32 %v5329_v20, 16  ;;  %v7194_v11 = vsel %vm6672_vm7, %v5008_v5, %v1307_v30  ;;  %v7198_v40 = vsel %vm6672_vm7, %v1309_v48, %v1310_v24  ;;  %v3680_v9 = vrot.slane %v3678_v39, 4  ;;  %v6250_v48 = vld [vmem:[%s6420_s27 + $0x78] sm:$0xff]  }
  0xc4   : > { %v3647_v10 = vor.u32 %v3646_v27, %v3643_v38  ;;  %v3657_v20 = vor.u32 %v3656_v55, %v7173_v37  ;;  %v1314_v30 = vrot.slane %v6301_v8, 5  ;;  %v3671_v38 = vor.u32 %v3670_v12, %v3667_v6  ;;  %v5333_v5 = vld [vmem:[%s6420_s27 + $0x3c] sm:$0xf] }
  0xc5   : > { %5842 = vmatmul.mubr.msk.bf16.gmra.mrb[8].mxu0 %vm685_vm3, %v6245_v61  ;;  %v3638_v61 = vrot.slane %v3636_v25, 5  ;;  %v1201_v25 = vld [vmem:[%s6420_s27 + $0x78] sm:$0xe]  ;;  %v7225_v50 = vrot.slane %v3660_v62, 5  ;;  %v3681_v39 = vor.u32 %v3680_v9, %v7200_v35  ;;  %v3684_v55 = vshll.u32 %v7209_v18, 16 }
  0xc6   : > { %5688 = vmatmul.mubr.msk.bf16.gmra.mrb[24].mxu1 %vm685_vm3, %v8205_v43  ;;  %5845 = vmatprep.mubr.msk.bf16.mxu0 %vm685_vm3, %v6247_v21  ;;  %v3629_v21 = vsel %vm6446_vm4, %v3624_v46, %v7152_v7  ;;  %v5009_v24 = vrot.slane %v1201_v25, 9  ;;  %v6302_v43 = vld [vmem:[%s6420_s27 + $0x88] sm:$0xf]  ;;  %v7233_v7 = vld [vmem:[%s6420_s27 + $0x40] sm:$0xf]  ;;  %v3648_v12 = vrot.slane %v3647_v10, 4  ;;  %v8209_v62 = vcombine.low %v6829_v14, %v6838_v42 }
  0xc7   : > { %5691 = vmatprep.mubr.msk.bf16.mxu1 %vm685_vm3, %v8206_v52  ;;  %v3639_v31 = vsel %vm6446_vm4, %v3634_v54, %v3638_v61  ;;  %v1321_v6 = vrot.slane %v6302_v43, 5  ;;  %8208 = vst [vmem:[#allocation7_spill] sm:$0xff] %v7233_v7  ;;  %v3658_v52 = vrot.slane %v3657_v20, 4  ;;  %v1316_v46 = vrot.slane %v1314_v30, 4  ;;  %v6303_v54 = vld [vmem:[%s6420_s27 + $0x80] sm:$0x1] }
  0xc8   : > { %v1317_v61 = vrot.slane %v6303_v54, 5  ;;  %v3672_v9 = vrot.slane %v3671_v38, 4  ;;  %v5010_v25 = vrot.slane %v1202_v16, 9  ;;  %v3689_v8 = vshrl.u32 %v5333_v5, 16  ;;  %v6251_v10 = vld [vmem:[%s6420_s27 + $0x84] sm:$0xff]  }
  0xc9   : > { %v3692_v43 = vshll.u32 %v5333_v5, 16  ;;  %v7247_v20 = vcombine.low %v3629_v21, %v3639_v31  ;;  %v7251_v14 = vsel %vm734_vm0, %v7051_v26, 0  ;;  %v3702_v38 = vshrl.u32 %v7233_v7, 16  ;;  %v6252_v21 = vld [vmem:[%s6420_s27 + $0x90] sm:$0xff]   ;;  %v6308_v18 = vld [vmem:[%s6420_s27 + $0xa0] sm:$0xf] }
  0xca   : > { %v3682_v16 = vrot.slane %v3681_v39, 4  ;;  %v3686_v5 = vrot.slane %v3684_v55, 5  ;;  %v1323_v54 = vrot.slane %v1321_v6, 4  ;;  %v3653_v31 = vsel %vm6446_vm4, %v3648_v12, %v7173_v37 }
  0xcb   : > { %v3663_v26 = vsel %vm6446_vm4, %v3658_v52, %v7225_v50  ;;  %v7266_v39 = vsel %vm6672_vm7, %v5009_v24, %v1314_v30  ;;  %v7270_v55 = vsel %vm6672_vm7, %v1316_v46, %v1317_v61  ;;  %v3677_v37 = vsel %vm6446_vm4, %v3672_v9, %v7200_v35  ;;  %v5339_v30 = vld [vmem:[%s6420_s27 + $0x54] sm:$0xf]  ;;  %v7287_v24 = vld [vmem:[%s6420_s27 + $0x58] sm:$0xf]  ;;  %v7292_v61 = vld [vmem:[%s6420_s27 + $0x90] sm:$0xe] }
  0xcc   : > { %v7283_v12 = vsel %vm6672_vm7, %v5010_v25, %v1321_v6  ;;  %v3691_v50 = vrot.slane %v3689_v8, 4  ;;  %v3694_v52 = vrot.slane %v3692_v43, 5  ;;  %v3704_v46 = vrot.slane %v3702_v38, 4 }
  0xcd   : > { %5846 = vmatmul.mubr.msk.bf16.gmra.mrb[12].mxu0 %vm685_vm3, %v6249_v33  ;;  %v8210_v33 = vcombine.low %v7036_v0, %v7055_v23  ;;  %v6304_v0 = vld [vmem:[%s6420_s27 + $0x8c] sm:$0x1]  ;;  %v3687_v36 = vsel %vm6446_vm4, %v3682_v16, %v3686_v5  ;;  %v3737_v25 = vshrl.u32 %v5339_v30, 16  ;;  %v3740_v8 = vshll.u32 %v5339_v30, 16 }
  0xce   : > { %5692 = vmatmul.mubr.msk.bf16.gmra.mrb[28].mxu1 %vm685_vm3, %v8209_v62  ;;  %5849 = vmatprep.mubr.msk.bf16.mxu0 %vm685_vm3, %v6250_v48  ;;  %v3698_v48 = vshll.u32 %v7233_v7, 16  ;;  %v1324_v23 = vrot.slane %v6304_v0, 5  ;;  %v5336_v62 = vld [vmem:[%s6420_s27 + $0x48] sm:$0xf]  ;;  %v7276_v0 = vld [vmem:[%s6420_s27 + $0x4c] sm:$0xf]  ;;  %v8212_v38 = vcombine.low %v7040_v29, %v7044_v53  ;;  %v7310_v16 = vcombine.low %v3653_v31, %v3663_v26 }
  0xcf   : > { %5697 = vmatprep.mubr.msk.bf16.mxu1 %vm685_vm3, %v8210_v33  ;;  %v7273_v33 = vld [vmem:[%s6420_s27 + $0x44] sm:$0x1]  ;;  %v3713_v27 = vshrl.u32 %v5336_v62, 16  ;;  %v3716_v15 = vshll.u32 %v5336_v62, 16  ;;  %v3722_v6 = vshll.u32 %v7276_v0, 16  ;;  %v3726_v9 = vshrl.u32 %v7276_v0, 16 }
  0xd0   : > { %8211 = vst [vmem:[#allocation8_spill] sm:$0xff] %v7273_v33  ;;  %v7289_v28 = vrot.slane %v3698_v48, 5  ;;  %v7298_v35 = vsel %vm6672_vm7, %v1323_v54, %v1324_v23  ;;  %v3746_v43 = vshll.u32 %v7287_v24, 16  ;;  %v3750_v48 = vshrl.u32 %v7287_v24, 16  ;;  %v5342_v31 = vld [vmem:[%s6420_s27 + $0x60] sm:$0xf] }
  0xd1   : > { %v3708_v5 = vshll.u32 %v7273_v33, 16  ;;  %v5011_v54 = vrot.slane %v7292_v61, 9  ;;  %v8213_v23 = vcombine.low %v7081_v34, %v7097_v4  ;;  %v7321_v29 = vcombine.low %v3677_v37, %v3687_v36  ;;  %v6253_v26 = vld [vmem:[%s6420_s27 + $0x9c] sm:$0xff]   ;;  %v6254_v30 = vld [vmem:[%s6420_s27 + $0xa8] sm:$0xff]  }
  0xd2   : > { %v3695_v53 = vor.u32 %v3694_v52, %v3691_v50  ;;  %v3715_v62 = vrot.slane %v3713_v27, 4  ;;  %v7332_v34 = vrot.slane %v3722_v6, 5  ;;  %v3728_v4 = vrot.slane %v3726_v9, 4  ;;  %v6305_v36 = vld [vmem:[%s8181_s1 + $0x8] sm:$0x3] }
  0xd3   : > { %v3739_v27 = vrot.slane %v3737_v25, 4  ;;  %v3742_v37 = vrot.slane %v3740_v8, 5  ;;  %v7341_v50 = vrot.slane %v3746_v43, 5  ;;  %v3752_v52 = vrot.slane %v3750_v48, 4  ;;  %v6306_v6 = vld [vmem:[%s6420_s27 + $0x94] sm:$0xf] }
  0xd4   : > { %v7347_v9 = vld [vmem:[%s6420_s27 + $0x64] sm:$0xf]  ;;  %v3761_v61 = vshrl.u32 %v5342_v31, 16  ;;  %v7349_v22 = vrot.slane %v3695_v53, 4  ;;  %v1335_v25 = vrot.slane %v6308_v18, 5  ;;  %v3729_v43 = vor.u32 %v3728_v4, %v7332_v34 }
  0xd5   : > { %5850 = vmatmul.mubr.msk.bf16.gmra.mrb[16].mxu0 %vm685_vm3, %v6251_v10  ;;  %8214 = vst [vmem:[#allocation9_spill] sm:$0xff] %v7347_v9  ;;  %v3764_v10 = vshll.u32 %v5342_v31, 16  ;;  %v3743_v31 = vor.u32 %v3742_v37, %v3739_v27  ;;  %v3753_v53 = vor.u32 %v3752_v52, %v7341_v50  ;;  %v8215_v18 = vcombine.low %v7088_v19, %v7101_v58  ;;  %v6255_v37 = vld [vmem:[%s6420_s27 + $0xb4] sm:$0xff]  }
  0xd6   : > { %5698 = vmatmul.mubr.msk.bf16.vlgmr.msra.gmra.mrb[0].mxu1 %vm685_vm3, %v8212_v38  ;;  %5853 = vmatprep.mubr.msk.bf16.mxu0 %vm685_vm3, %v6252_v21  ;;  %v3718_v21 = vrot.slane %v3716_v15, 5  ;;  %v7330_v38 = vld [vmem:[%s6420_s27 + $0x50] sm:$0x1]  ;;  %v7339_v15 = vld [vmem:[%s6420_s27 + $0x5c] sm:$0x1]  ;;  %v8216_v27 = vcombine.low %v7106_v2, %v7110_v1  ;;  %v1337_v52 = vrot.slane %v1335_v25, 4 }
  0xd7   : > { %5730 = vmatpush3.bf16.msra.mxu1 %v7077_v49  ;;  %5701 = vmatprep.mubr.msk.bf16.mxu1 %vm685_vm3, %v8213_v23  ;;  %v3705_v49 = vor.u32 %v3704_v46, %v7289_v28  ;;  %v7343_v46 = vrot.slane %v3708_v5, 5  ;;  %v1328_v23 = vrot.slane %v6306_v6, 5  ;;  %v3732_v48 = vshll.u32 %v7330_v38, 16  ;;  %v1204_v5 = vld [vmem:[%s6420_s27 + $0x9c] sm:$0xe] }
  0xd8   : > { %6196 = vmatprep.subr.msk.bf16.mxu1 %vm734_vm0, %v6305_v36  ;;  %v6307_v36 = vld [vmem:[%s6420_s27 + $0x98] sm:$0x1]  ;;  %v3719_v7 = vor.u32 %v3718_v21, %v3715_v62  ;;  %v3756_v6 = vshll.u32 %v7339_v15, 16  ;;  %v3774_v62 = vshrl.u32 %v7347_v9, 16  ;;  %v3766_v4 = vrot.slane %v3764_v10, 5 }
  0xd9   : > { %v1331_v33 = vrot.slane %v6307_v36, 5  ;;  %v3706_v8 = vrot.slane %v3705_v49, 4  ;;  %v3770_v36 = vshll.u32 %v7347_v9, 16  ;;  %v7368_v21 = vsel %vm6672_vm7, %v5011_v54, %v1328_v23  ;;  %v7379_v2 = vld [vmem:[%s6420_s27 + $0x68] sm:$0x1] }
  0xda   : > { %v3763_v49 = vrot.slane %v3761_v61, 4  ;;  %v3720_v19 = vrot.slane %v3719_v7, 4  ;;  %v5012_v58 = vrot.slane %v1204_v5, 9  ;;  %v3730_v3 = vrot.slane %v3729_v43, 4  ;;  %8217 = vst [vmem:[#allocation10_spill] sm:$0xff] %v7379_v2  ;;  %v6256_v5 = vld [vmem:[%s6420_s27 + $0xc0] sm:$0xff]  }
  0xdb   : > { %v3734_v54 = vrot.slane %v3732_v48, 5  ;;  %v3758_v63 = vrot.slane %v3756_v6, 5  ;;  %v1342_v61 = vrot.slane %v6814_v56, 5  ;;  %v3744_v10 = vrot.slane %v3743_v31, 4  ;;  %v1206_v31 = vld [vmem:[%s6420_s27 + $0xb4] sm:$0xe] }
  0xdc   : > { %v3754_v51 = vrot.slane %v3753_v53, 4  ;;  %v7381_v1 = vrot.slane %v3770_v36, 5  ;;  %v3776_v7 = vrot.slane %v3774_v62, 4  ;;  %v3701_v43 = vsel %vm6446_vm4, %v7349_v22, %v7289_v28  ;;  %v6310_v62 = vld [vmem:[%s6420_s27 + $0xb0] sm:$0x1] }
  0xdd   : > { %5854 = vmatmul.mubr.msk.bf16.gmra.mrb[20].mxu0 %vm685_vm3, %v6253_v26  ;;  %v1330_v26 = vrot.slane %v1328_v23, 4  ;;  %v1205_v23 = vld [vmem:[%s6420_s27 + $0xa8] sm:$0xe]  ;;  %v3711_v48 = vsel %vm6446_vm4, %v3706_v8, %v7343_v46  ;;  %v3767_v6 = vor.u32 %v3766_v4, %v3763_v49  ;;  %v3725_v53 = vsel %vm6446_vm4, %v3720_v19, %v7332_v34  ;;  %v5345_v46 = vld [vmem:[%s6420_s27 + $0x6c] sm:$0xf] }
  0xde   : > { %5702 = vmatmul.mubr.msk.bf16.gmra.mrb[4].mxu1 %vm685_vm3, %v8215_v18  ;;  %5857 = vmatprep.mubr.msk.bf16.mxu0 %vm685_vm3, %v6254_v30  ;;  %v6309_v18 = vld [vmem:[%s6420_s27 + $0xa4] sm:$0x1]  ;;  %v7401_v36 = vsel %vm6672_vm7, %v5012_v58, %v1335_v25  ;;  %v5013_v28 = vrot.slane %v1205_v23, 9  ;;  %v1344_v8 = vrot.slane %v1342_v61, 4  ;;  %v3780_v49 = vshll.u32 %v7379_v2, 16 }
  0xdf   : > { %5705 = vmatprep.mubr.msk.bf16.mxu1 %vm685_vm3, %v8216_v27  ;;  %v1338_v30 = vrot.slane %v6309_v18, 5  ;;  %v7393_v56 = vsel %vm6672_vm7, %v1330_v26, %v1331_v33  ;;  %v3735_v33 = vsel %vm6446_vm4, %v3730_v3, %v3734_v54  ;;  %v1345_v26 = vrot.slane %v6310_v62, 5  ;;  %v5348_v18 = vld [vmem:[%s6420_s27 + $0x78] sm:$0xf]  ;;  %v7456_v54 = vld [vmem:[%s6420_s27 + $0xbc] sm:$0x1] }
  0xe0   : > { %v3749_v34 = vsel %vm6446_vm4, %v3744_v10, %v7341_v50  ;;  %v3759_v25 = vsel %vm6446_vm4, %v3754_v51, %v3758_v63  ;;  %v3777_v4 = vor.u32 %v3776_v7, %v7381_v1  ;;  %v5014_v27 = vrot.slane %v1206_v31, 9  ;;  %v7430_v51 = vld [vmem:[%s6420_s27 + $0x70] sm:$0xf]  ;;  %v7460_v10 = vld [vmem:[%s6420_s27 + $0x7c] sm:$0xf] }
  0xe1   : > { %v7405_v22 = vsel %vm6672_vm7, %v1337_v52, %v1338_v30  ;;  %v8219_v3 = vcombine.low %v7123_v45, %v7127_v59  ;;  %v7426_v19 = vrot.slane %v3767_v6, 4  ;;  %v1349_v50 = vrot.slane %v6838_v42, 5  ;;  %8220 = vst [vmem:[#allocation12_spill] sm:$0xff] %v7430_v51  ;;  %8222 = vst [vmem:[#allocation13_spill] sm:$0xff] %v7460_v10  ;;  %v5351_v7 = vld [vmem:[%s6420_s27 + $0x84] sm:$0xf] }
  0xe2   : > { %8218 = vst [vmem:[#allocation11_spill] sm:$0xff] %v7405_v22  ;;  %v3785_v63 = vshrl.u32 %v5345_v46, 16  ;;  %v8221_v45 = vcombine.low %v7131_v47, %v7158_v41  ;;  %v7438_v58 = vcombine.low %v3725_v53, %v3735_v33  ;;  %v7444_v42 = vsel %vm6672_vm7, %v5013_v28, %v1342_v61  ;;  %v6257_v61 = vld [vmem:[%s6420_s27 + $0xcc] sm:$0xff]   ;;  %v7472_v31 = vld [vmem:[%s6420_s27 + $0x88] sm:$0xf] }
  0xe3   : > { %v7447_v30 = vcombine.low %v3749_v34, %v3759_v25  ;;  %v7451_v47 = vsel %vm6672_vm7, %v1344_v8, %v1345_v26  ;;  %v7453_v41 = vrot.slane %v3780_v49, 5  ;;  %v3794_v6 = vshll.u32 %v7430_v51, 16  ;;  %8223 = vst [vmem:[#allocation14_spill] sm:$0xff] %v7472_v31  ;;  %v5354_v62 = vld [vmem:[%s6420_s27 + $0x90] sm:$0xf] }
  0xe4   : > { %v7478_v28 = vrot.slane %v1349_v50, 4  ;;  %v7480_v33 = vrot.slane %v3785_v63, 4  ;;  %v3798_v8 = vshrl.u32 %v7430_v51, 16  ;;  %v3809_v26 = vshrl.u32 %v5348_v18, 16  ;;  %v7487_v25 = vld [vmem:[%s6420_s27 + $0x94] sm:$0xf] }
  0xe5   : > { %5858 = vmatmul.mubr.msk.bf16.gmra.mrb[24].mxu0 %vm685_vm3, %v6255_v37  ;;  %v7424_v37 = vcombine.low %v3701_v43, %v3711_v48  ;;  %v7468_v43 = vsel %vm6672_vm7, %v5014_v27, %v1349_v50  ;;  %v3788_v48 = vshll.u32 %v5345_v46, 16  ;;  %v3812_v49 = vshll.u32 %v5348_v18, 16  ;;  %8224 = vst [vmem:[#allocation15_spill] sm:$0xff] %v7487_v25  ;;  %v7525_v2 = vld [vmem:[%s6420_s27 + $0x8c] sm:$0x1] }
  0xe6   : > { %5706 = vmatmul.mubr.msk.bf16.gmra.mrb[8].mxu1 %vm685_vm3, %v8219_v3  ;;  %5861 = vmatprep.mubr.msk.bf16.mxu0 %vm685_vm3, %v6256_v5  ;;  %v7464_v5 = vrot.slane %v3777_v4, 4  ;;  %v3818_v46 = vshll.u32 %v7460_v10, 16  ;;  %v3822_v34 = vshrl.u32 %v7460_v10, 16  ;;  %v3833_v4 = vshrl.u32 %v5351_v7, 16 }
  0xe7   : > { %5709 = vmatprep.mubr.msk.bf16.mxu1 %vm685_vm3, %v8221_v45  ;;  %v3836_v27 = vshll.u32 %v5351_v7, 16  ;;  %v3842_v3 = vshll.u32 %v7472_v31, 16  ;;  %v3846_v50 = vshrl.u32 %v7472_v31, 16  ;;  %v7497_v45 = vld [vmem:[%s6420_s27 + $0x74] sm:$0x1]  ;;  %v3790_v18 = vrot.slane %v3788_v48, 5 }
  0xe8   : > { %v3857_v52 = vshrl.u32 %v5354_v62, 16  ;;  %v3860_v53 = vshll.u32 %v5354_v62, 16  ;;  %v8225_v7 = vcombine.low %v7142_v60, %v7167_v44  ;;  %v3800_v59 = vrot.slane %v3798_v8, 4  ;;  %v5357_v48 = vld [vmem:[%s6420_s27 + $0x9c] sm:$0xf] }
  0xe9   : > { %v3866_v63 = vshll.u32 %v7487_v25, 16  ;;  %v3870_v23 = vshrl.u32 %v7487_v25, 16  ;;  %v8226_v62 = vcombine.low %v7182_v17, %v7186_v57  ;;  %v7515_v44 = vld [vmem:[%s6420_s27 + $0x80] sm:$0x1]  ;;  %v3811_v60 = vrot.slane %v3809_v26, 4 }
  0xea   : > { %8227 = vst [vmem:[#allocation16_spill] sm:$0xff] %v7515_v44  ;;  %v3835_v31 = vrot.slane %v3833_v4, 4  ;;  %v3838_v8 = vrot.slane %v3836_v27, 5  ;;  %v7519_v10 = vrot.slane %v3842_v3, 5  ;;  %v3848_v51 = vrot.slane %v3846_v50, 4 }
  0xeb   : > { %v7522_v25 = vld [vmem:[%s6420_s27 + $0xa0] sm:$0xf]  ;;  %v3859_v17 = vrot.slane %v3857_v52, 4  ;;  %v3862_v57 = vrot.slane %v3860_v53, 5  ;;  %v3884_v9 = vshll.u32 %v5357_v48, 16  ;;  %v3791_v26 = vor.u32 %v3790_v18, %v7480_v33 }
  0xec   : > { %v3828_v27 = vshll.u32 %v7515_v44, 16  ;;  %v7534_v3 = vld [vmem:[%s6420_s27 + $0x98] sm:$0x1]  ;;  %v3890_v50 = vshll.u32 %v7522_v25, 16  ;;  %v3894_v52 = vshrl.u32 %v7522_v25, 16  ;;  %v3839_v22 = vor.u32 %v3838_v8, %v3835_v31 }
  0xed   : > { %5862 = vmatmul.mubr.msk.bf16.gmra.mrb[28].mxu0 %vm685_vm3, %v6257_v61  ;;  %v7505_v61 = vrot.slane %v3794_v6, 5  ;;  %v3824_v6 = vrot.slane %v3822_v34, 4  ;;  %v3872_v34 = vrot.slane %v3870_v23, 4  ;;  %v3852_v33 = vshll.u32 %v7525_v2, 16 }
  0xee   : > { %5710 = vmatmul.mubr.msk.bf16.gmra.mrb[12].mxu1 %vm685_vm3, %v8225_v7  ;;  %5867 = vmatprep.mubr.msk.bf16.mxu0 %vm685_vm3, %v7247_v20  ;;  %v3814_v7 = vrot.slane %v3812_v49, 5  ;;  %v7517_v20 = vrot.slane %v3818_v46, 5  ;;  %v3804_v49 = vshll.u32 %v7497_v45, 16  ;;  %v7529_v46 = vrot.slane %v3866_v63, 5 }
  0xef   : > { %5713 = vmatprep.mubr.msk.bf16.mxu1 %vm685_vm3, %v8226_v62  ;;  %v3881_v62 = vshrl.u32 %v5357_v48, 16  ;;  %v3801_v4 = vor.u32 %v3800_v59, %v7505_v61  ;;  %v3849_v23 = vor.u32 %v3848_v51, %v7519_v10  ;;  %v3863_v59 = vor.u32 %v3862_v57, %v3859_v17  ;;  %v7567_v57 = vld [vmem:[%s6420_s27 + $0xa4] sm:$0x1] }
  0xf0   : > { %v3815_v53 = vor.u32 %v3814_v7, %v3811_v60  ;;  %v3825_v48 = vor.u32 %v3824_v6, %v7517_v20  ;;  %v3886_v18 = vrot.slane %v3884_v9, 5  ;;  %v8228_v44 = vcombine.low %v7194_v11, %v7198_v40 }
  0xf1   : > { %v3883_v63 = vrot.slane %v3881_v62, 4  ;;  %v8229_v31 = vrot.slane %v7456_v54, 5  ;;  %v3806_v51 = vrot.slane %v3804_v49, 5  ;;  %v3873_v60 = vor.u32 %v3872_v34, %v7529_v46  ;;  %v7570_v34 = vld [vmem:[%s6420_s27 + $0xac] sm:$0xf] }
  0xf2   : > { %v3876_v9 = vshll.u32 %v7534_v3, 16  ;;  %v8230_v11 = vcombine.low %v7266_v39, %v7270_v55  ;;  %v3792_v40 = vrot.slane %v3791_v26, 4  ;;  %v7563_v54 = vrot.slane %v3890_v50, 5 }
  0xf3   : > { %v3816_v7 = vrot.slane %v3815_v53, 4  ;;  %v3826_v6 = vrot.slane %v3825_v48, 4  ;;  %v3830_v8 = vrot.slane %v3828_v27, 5  ;;  %v3854_v17 = vrot.slane %v3852_v33, 5  ;;  %v7580_v48 = vld [vmem:[%s6420_s27 + $0xb0] sm:$0x1] }
  0xf4   : > { %v3840_v39 = vrot.slane %v3839_v22, 4  ;;  %v3850_v55 = vrot.slane %v3849_v23, 4  ;;  %v3864_v62 = vrot.slane %v3863_v59, 4  ;;  %v3887_v49 = vor.u32 %v3886_v18, %v3883_v63 }
  0xf5   : > { %5868 = vmatmul.mubr.msk.bf16.vlgmr.msra.gmra.mrb[0].mxu0 %vm685_vm3, %v7310_v16  ;;  %v7553_v16 = vsel %vm6672_vm7, %v7478_v28, %v8229_v31  ;;  %v3896_v28 = vrot.slane %v3894_v52, 4  ;;  %v3878_v26 = vrot.slane %v3876_v9, 5  ;;  %v3797_v52 = vsel %vm6446_vm4, %v3792_v40, %v7505_v61 }
  0xf6   : > { %5714 = vmatmul.mubr.msk.bf16.gmra.mrb[16].mxu1 %vm685_vm3, %v8228_v44  ;;  %5900 = vmatpush3.bf16.msra.mxu0 %v7251_v14  ;;  %v3802_v14 = vrot.slane %v3801_v4, 4  ;;  %v5360_v44 = vld [vmem:[%s6420_s27 + $0xa8] sm:$0xf]  ;;  %v3900_v22 = vshll.u32 %v7567_v57, 16  ;;  %v3821_v33 = vsel %vm6446_vm4, %v3816_v7, %v7517_v20  ;;  %v3831_v23 = vsel %vm6446_vm4, %v3826_v6, %v3830_v8 }
  0xf7   : > { %5717 = vmatprep.mubr.msk.bf16.mxu1 %vm685_vm3, %v8230_v11  ;;  %5871 = vmatprep.mubr.msk.bf16.mxu0 %vm685_vm3, %v7321_v29  ;;  %v3874_v29 = vrot.slane %v3873_v60, 4  ;;  %v3905_v4 = vshrl.u32 %v5360_v44, 16  ;;  %v3908_v50 = vshll.u32 %v5360_v44, 16  ;;  %v3897_v53 = vor.u32 %v3896_v28, %v7563_v54  ;;  %v5409_v11 = vld [vmem:[%s6420_s27 + $0x48] sm:$0xe] }
  0xf8   : > { %v3807_v27 = vsel %vm6446_vm4, %v3802_v14, %v3806_v51  ;;  %v3914_v59 = vshll.u32 %v7570_v34, 16  ;;  %v3918_v61 = vshrl.u32 %v7570_v34, 16  ;;  %v3845_v63 = vsel %vm6446_vm4, %v3840_v39, %v7519_v10  ;;  %v7645_v39 = vld [vmem:[%s6420_s27 + $0xb8] sm:$0xf] }
  0xf9   : > { %v3855_v18 = vsel %vm6446_vm4, %v3850_v55, %v3854_v17  ;;  %v3869_v20 = vsel %vm6446_vm4, %v3864_v62, %v7529_v46  ;;  %v3888_v31 = vrot.slane %v3887_v49, 4  ;;  %v8231_v51 = vcombine.low %v7283_v12, %v7298_v35 }
  0xfa   : > { %v3907_v10 = vrot.slane %v3905_v4, 4  ;;  %v3910_v60 = vrot.slane %v3908_v50, 5  ;;  %v3924_v9 = vshll.u32 %v7580_v48, 16  ;;  %v8232_v46 = vcombine.low %v7368_v21, %v7393_v56  ;;  %v5363_v21 = vld [vmem:[%s6420_s27 + $0xb4] sm:$0xf] }
  0xfb   : > { %v5030_v12 = vcombine.low %v7444_v42, %v7451_v47  ;;  %v8233_v35 = vsel %vm6446_vm4, %v7464_v5, %v7453_v41  ;;  %v3898_v14 = vrot.slane %v3897_v53, 4  ;;  %v3902_v28 = vrot.slane %v3900_v22, 5  ;;  %v5411_v4 = vld [vmem:[%s6420_s27 + $0x60] sm:$0xe]  ;;  %v5412_v53 = vld [vmem:[%s6420_s27 + $0x6c] sm:$0xe] }
  0xfc   : > { %v5031_v56 = vcombine.low %v7468_v43, %v7553_v16  ;;  %v7628_v44 = vcombine.low %v3797_v52, %v3807_v27  ;;  %v7630_v42 = vrot.slane %v3914_v59, 5  ;;  %v3920_v47 = vrot.slane %v3918_v61, 4  ;;  %v8242_v16 = vld [vmem:[#allocation4_spill] sm:$0xff] }
  0xfd   : > { %5872 = vmatmul.mubr.msk.bf16.gmra.mrb[4].mxu0 %vm685_vm3, %v7424_v37  ;;  %v3879_v37 = vsel %vm6446_vm4, %v3874_v29, %v3878_v26  ;;  %v7632_v41 = vcombine.low %v3821_v33, %v3831_v23  ;;  %v7634_v5 = vcombine.low %v3845_v63, %v3855_v18  ;;  %v3893_v6 = vsel %vm6446_vm4, %v3888_v31, %v7563_v54  ;;  %v8235_v23 = vld [vmem:[#allocation11_spill] sm:$0xff]  ;;  %v5366_v63 = vld [vmem:[%s6420_s27 + $0xc0] sm:$0xf]  ;;  %v8237_v18 = vld [vmem:[#allocation9_spill] sm:$0xff] }
  0xfe   : > { %5718 = vmatmul.mubr.msk.bf16.gmra.mrb[20].mxu1 %vm685_vm3, %v8231_v51  ;;  %5875 = vmatprep.mubr.msk.bf16.mxu0 %vm685_vm3, %v7438_v58  ;;  %v8234_v58 = vsel %vm6446_vm4, %v7426_v19, %v7381_v1  ;;  %v7636_v7 = vcombine.low %v3869_v20, %v3879_v37  ;;  %v5425_v1 = vrot.slane %v5409_v11, 9  ;;  %v5410_v19 = vld [vmem:[%s6420_s27 + $0x54] sm:$0xe]  ;;  %v3911_v8 = vor.u32 %v3910_v60, %v3907_v10  ;;  %v8238_v31 = vld [vmem:[#allocation10_spill] sm:$0xff] }
  0xff   : > { %5721 = vmatprep.mubr.msk.bf16.mxu1 %vm685_vm3, %v8232_v46  ;;  %v5379_v40 = vcombine.low %v8234_v58, %v8233_v35  ;;  %v7642_v17 = vrot.slane %v3924_v9, 5  ;;  %v3929_v55 = vshrl.u32 %v5363_v21, 16  ;;  %v3903_v62 = vsel %vm6446_vm4, %v3898_v14, %v3902_v28  ;;  %v8239_v9 = vld [vmem:[#allocation12_spill] sm:$0xff]  ;;  %v7694_v35 = vld [vmem:[%s6420_s27 + $0xbc] sm:$0x1] }
 0x100   : > { %v3932_v49 = vshll.u32 %v5363_v21, 16  ;;  %v4388_v29 = vrot.slane %v7276_v0, 5  ;;  %v4391_v26 = vrot.slane %v7330_v38, 5  ;;  %v3921_v50 = vor.u32 %v3920_v47, %v7630_v42  ;;  %v7697_v58 = vld [vmem:[%s6420_s27 + $0xc4] sm:$0xf] }
 0x101   : > { %v5426_v52 = vrot.slane %v5410_v19, 9  ;;  %v4395_v54 = vrot.slane %v7287_v24, 5  ;;  %v4398_v27 = vrot.slane %v7339_v15, 5  ;;  %v3938_v22 = vshll.u32 %v7645_v39, 16  ;;  %v5413_v19 = vld [vmem:[%s6420_s27 + $0x78] sm:$0xe] }
 0x102   : > { %v3942_v33 = vshrl.u32 %v7645_v39, 16  ;;  %v7662_v0 = vsel %vm6672_vm7, %v5425_v1, %v4388_v29  ;;  %v4390_v38 = vrot.slane %v4388_v29, 4  ;;  %v8236_v59 = vcombine.low %v7401_v36, %v8235_v23  ;;  %v8240_v23 = vld [vmem:[#allocation13_spill] sm:$0xff] }
 0x103   : > { %v7669_v24 = vcombine.low %v3893_v6, %v3903_v62  ;;  %v7673_v15 = vsel %vm6672_vm7, %v5426_v52, %v4395_v54  ;;  %v5427_v61 = vrot.slane %v5411_v4, 9  ;;  %v4402_v20 = vrot.slane %v8237_v18, 5  ;;  %v6258_v6 = vld [vmem:[%s6420_s27 + $0xc] sm:$0xff]  }
 0x104   : > { %v7679_v36 = vsel %vm6672_vm7, %v4390_v38, %v4391_v26  ;;  %v4405_v51 = vrot.slane %v8238_v31, 5  ;;  %v5428_v37 = vrot.slane %v5412_v53, 9  ;;  %v4409_v11 = vrot.slane %v8239_v9, 5 }
 0x105   : > { %5876 = vmatmul.mubr.msk.bf16.gmra.mrb[8].mxu0 %vm685_vm3, %v7447_v30  ;;  %v4397_v30 = vrot.slane %v4395_v54, 4  ;;  %v5442_v10 = vcombine.low %v7662_v0, %v7679_v36  ;;  %v4412_v46 = vrot.slane %v7497_v45, 5  ;;  %v7703_v14 = vsel %vm6672_vm7, %v5427_v61, %v4402_v20 }
 0x106   : > { %5722 = vmatmul.mubr.msk.bf16.gmra.mrb[24].mxu1 %vm685_vm3, %v8236_v59  ;;  %5879 = vmatprep.mubr.msk.bf16.mxu0 %vm685_vm3, %v5379_v40  ;;  %v4404_v28 = vrot.slane %v4402_v20, 4  ;;  %v7705_v21 = vrot.slane %v3929_v55, 4  ;;  %v3953_v47 = vshrl.u32 %v5366_v63, 16  ;;  %v7709_v45 = vsel %vm6672_vm7, %v5428_v37, %v4409_v11  ;;  %v5140_v55 = vld [vmem:[%s6420_s27 + $0x78] sm:$0xf]  ;;  %v8241_v59 = vld [vmem:[#allocation16_spill] sm:$0xff] }
 0x107   : > { %5725 = vmatprep.mubr.msk.bf16.mxu1 %vm685_vm3, %v5030_v12  ;;  %v7687_v60 = vsel %vm6672_vm7, %v4397_v30, %v4398_v27  ;;  %v7691_v12 = vrot.slane %v3911_v8, 4  ;;  %v4411_v1 = vrot.slane %v4409_v11, 4  ;;  %v7713_v8 = vrot.slane %v3921_v50, 4 }
 0x108   : > { %v5443_v40 = vcombine.low %v7673_v15, %v7687_v60  ;;  %v7715_v62 = vrot.slane %v3932_v49, 5  ;;  %v3956_v29 = vshll.u32 %v5366_v63, 16  ;;  %v7719_v26 = vsel %vm6672_vm7, %v4404_v28, %v4405_v51  ;;  %v8244_v28 = vld [vmem:[#allocation14_spill] sm:$0xff] }
 0x109   : > { %v7722_v4 = vrot.slane %v3938_v22, 5  ;;  %v7724_v52 = vrot.slane %v3942_v33, 4  ;;  %v5444_v54 = vcombine.low %v7703_v14, %v7719_v26  ;;  %v7730_v27 = vsel %vm6672_vm7, %v4411_v1, %v4412_v46  ;;  %v5414_v33 = vld [vmem:[%s6420_s27 + $0x84] sm:$0xe]  ;;  %v6259_v1 = vld [vmem:[%s6420_s27 + $0x18] sm:$0xff]  }
 0x10a   : > { %v3948_v49 = vshll.u32 %v7694_v35, 16  ;;  %v3962_v50 = vshll.u32 %v7697_v58, 16  ;;  %v5445_v53 = vcombine.low %v7709_v45, %v7730_v27  ;;  %v5429_v22 = vrot.slane %v5413_v19, 9  ;;  %v6321_v60 = vld [vmem:[%s6420_s27 + $0xa0] sm:$0xf] }
 0x10b   : > { %v3955_v38 = vrot.slane %v3953_v47, 4  ;;  %v4419_v30 = vrot.slane %v8241_v59, 5  ;;  %v2275_v61 = vshrl.u32 %v5140_v55, 16  ;;  %v3958_v63 = vrot.slane %v3956_v29, 5  ;;  %v5369_v29 = vld [vmem:[%s6420_s27 + $0xcc] sm:$0xf] }
 0x10c   : > { %v3966_v18 = vshrl.u32 %v7697_v58, 16  ;;  %v2278_v43 = vshll.u32 %v5140_v55, 16  ;;  %v5430_v37 = vrot.slane %v5414_v33, 9  ;;  %v3917_v9 = vsel %vm6446_vm4, %v7691_v12, %v7630_v42  ;;  %v7773_v55 = vld [vmem:[%s6420_s27 + $0xd0] sm:$0xf] }
 0x10d   : > { %5880 = vmatmul.mubr.msk.bf16.gmra.mrb[12].mxu0 %vm685_vm3, %v7628_v44  ;;  %v4416_v44 = vrot.slane %v8240_v23, 5  ;;  %v2277_v51 = vrot.slane %v2275_v61, 4  ;;  %v3935_v11 = vor.u32 %v7715_v62, %v7705_v21  ;;  %v4423_v47 = vrot.slane %v8244_v28, 5  ;;  %v6260_v21 = vld [vmem:[%s6420_s27 + $0x24] sm:$0xff]   ;;  %v6325_v27 = vld [vmem:[%s6420_s27 + $0xac] sm:$0xf] }
 0x10e   : > { %5726 = vmatmul.mubr.msk.bf16.gmra.mrb[28].mxu1 %vm685_vm3, %v5031_v56  ;;  %5883 = vmatprep.mubr.msk.bf16.mxu0 %vm685_vm3, %v7632_v41  ;;  %v8243_v56 = vld [vmem:[#allocation5_spill] sm:$0xff]  ;;  %v2280_v46 = vrot.slane %v2278_v43, 5  ;;  %v3927_v19 = vsel %vm6446_vm4, %v7713_v8, %v7642_v17  ;;  %v4426_v12 = vrot.slane %v7525_v2, 5  ;;  %v7781_v62 = vrot.slane %v3962_v50, 5  ;;  %v5415_v8 = vld [vmem:[%s6420_s27 + $0x90] sm:$0xe] }
 0x10f   : > { %5731 = vmatprep.mubr.msk.bf16.mxu1 %vm685_vm3, %v6258_v6  ;;  %v2297_v41 = vsel %vm6446_vm4, %v8243_v56, %v8242_v16  ;;  %v7755_v20 = vsel %vm6672_vm7, %v5429_v22, %v4416_v44  ;;  %v4418_v31 = vrot.slane %v4416_v44, 4  ;;  %v3945_v6 = vor.u32 %v7724_v52, %v7722_v4  ;;  %v7787_v52 = vld [vmem:[%s6420_s27 + $0xc8] sm:$0x1]  ;;  %v8246_v16 = vld [vmem:[#allocation2_spill] sm:$0xff] }
 0x110   : > { %v3968_v22 = vrot.slane %v3966_v18, 4  ;;  %v2281_v17 = vor.u32 %v2280_v46, %v2277_v51  ;;  %v3950_v23 = vrot.slane %v3948_v49, 5  ;;  %v3959_v44 = vor.u32 %v3958_v63, %v3955_v38  ;;  %v8247_v51 = vld [vmem:[#allocation3_spill] sm:$0xff] }
 0x111   : > { %v7777_v42 = vsel %vm6672_vm7, %v4418_v31, %v4419_v30  ;;  %v7791_v59 = vsel %vm6672_vm7, %v5430_v37, %v4423_v47  ;;  %v4425_v30 = vrot.slane %v4423_v47, 4  ;;  %v3977_v2 = vshrl.u32 %v5369_v29, 16 }
 0x112   : > { %v5446_v33 = vcombine.low %v7755_v20, %v7777_v42  ;;  %v3980_v50 = vshll.u32 %v5369_v29, 16  ;;  %v3986_v61 = vshll.u32 %v7773_v55, 16  ;;  %v2282_v18 = vrot.slane %v2281_v17, 4  ;;  %v6261_v29 = vld [vmem:[%s6420_s27 + $0x30] sm:$0xff]  }
 0x113   : > { %v3990_v49 = vshrl.u32 %v7773_v55, 16  ;;  %v7802_v38 = vsel %vm6672_vm7, %v4425_v30, %v4426_v12  ;;  %v5431_v63 = vrot.slane %v5415_v8, 9  ;;  %v3969_v56 = vor.u32 %v3968_v22, %v7781_v62 }
 0x114   : > { %v3972_v31 = vshll.u32 %v7787_v52, 16  ;;  %v5447_v37 = vcombine.low %v7791_v59, %v7802_v38  ;;  %v5385_v46 = vcombine.low %v3917_v9, %v3927_v19  ;;  %v3936_v28 = vrot.slane %v3935_v11, 4  ;;  %v5416_v11 = vld [vmem:[%s6420_s27 + $0x9c] sm:$0xe] }
 0x115   : > { %5884 = vmatmul.mubr.msk.bf16.gmra.mrb[16].mxu0 %vm685_vm3, %v7634_v5  ;;  %v8245_v5 = vld [vmem:[#allocation15_spill] sm:$0xff]  ;;  %v3946_v47 = vrot.slane %v3945_v6, 4  ;;  %v3960_v12 = vrot.slane %v3959_v44, 4  ;;  %v4433_v8 = vrot.slane %v7534_v3, 5  ;;  %v3979_v30 = vrot.slane %v3977_v2, 4  ;;  %v6262_v19 = vld [vmem:[%s6420_s27 + $0x3c] sm:$0xff]  }
 0x116   : > { %5732 = vmatmul.mubr.msk.bf16.vlgmr.msra.gmra.mrb[0].mxu1 %vm685_vm3, %v6259_v1  ;;  %5887 = vmatprep.mubr.msk.bf16.mxu0 %vm685_vm3, %v7636_v7  ;;  %v4430_v43 = vrot.slane %v8245_v5, 5  ;;  %v2287_v7 = vsel %vm6446_vm4, %v2282_v18, %v8247_v51  ;;  %v3982_v18 = vrot.slane %v3980_v50, 5  ;;  %v7825_v5 = vrot.slane %v3986_v61, 5 }
 0x117   : > { %5934 = vmatpush3.bf16.msra.mxu1 %v8246_v16  ;;  %5735 = vmatprep.mubr.msk.bf16.mxu1 %vm685_vm3, %v6260_v21  ;;  %v7814_v1 = vcombine.low %v2287_v7, %v2297_v41  ;;  %v7818_v21 = vld [vmem:[%s6420_s27 + $0xd4] sm:$0x1]  ;;  %v3992_v9 = vrot.slane %v3990_v49, 4  ;;  %v3970_v41 = vrot.slane %v3969_v56, 4  ;;  %v3974_v6 = vrot.slane %v3972_v31, 5 }
 0x118   : > { %v7822_v22 = vsel %vm6672_vm7, %v5431_v63, %v4430_v43  ;;  %v4432_v17 = vrot.slane %v4430_v43, 4  ;;  %v3941_v63 = vsel %vm6446_vm4, %v3936_v28, %v7722_v4  ;;  %v3951_v2 = vsel %vm6446_vm4, %v3946_v47, %v3950_v23  ;;  %v6312_v16 = vld [vmem:[%s6420_s27 + $0x1c] sm:$0xf]  ;;  %v5417_v28 = vld [vmem:[%s6420_s27 + $0xa8] sm:$0xe] }
 0x119   : > { %v3996_v50 = vshll.u32 %v7818_v21, 16  ;;  %v5432_v61 = vrot.slane %v5416_v11, 9  ;;  %v4437_v49 = vrot.slane %v7522_v25, 5  ;;  %v3965_v4 = vsel %vm6446_vm4, %v3960_v12, %v7781_v62  ;;  %v5405_v62 = vld [vmem:[%s6420_s27 + $0x18] sm:$0xe]  ;;  %v6263_v47 = vld [vmem:[%s6420_s27 + $0x48] sm:$0xff]  }
 0x11a   : > { %v7831_v44 = vsel %vm6672_vm7, %v4432_v17, %v4433_v8  ;;  %v3993_v43 = vor.u32 %v3992_v9, %v7825_v5  ;;  %v4440_v23 = vrot.slane %v7567_v57, 5  ;;  %v3975_v25 = vsel %vm6446_vm4, %v3970_v41, %v3974_v6  ;;  %v6313_v11 = vld [vmem:[%s6420_s27 + $0x20] sm:$0x1] }
 0x11b   : > { %v5448_v3 = vcombine.low %v7822_v22, %v7831_v44  ;;  %v4360_v56 = vrot.slane %v6312_v16, 5  ;;  %v7857_v31 = vsel %vm6672_vm7, %v5432_v61, %v4437_v49  ;;  %v4439_v51 = vrot.slane %v4437_v49, 4  ;;  %v5418_v49 = vld [vmem:[%s6420_s27 + $0xb4] sm:$0xe] }
 0x11c   : > { %v5386_v7 = vcombine.low %v3941_v63, %v3951_v2  ;;  %v3994_v17 = vrot.slane %v3993_v43, 4  ;;  %v5433_v41 = vrot.slane %v5417_v28, 9  ;;  %v4444_v6 = vrot.slane %v7570_v34, 5  ;;  %v5406_v2 = vld [vmem:[%s6420_s27 + $0x24] sm:$0xe] }
 0x11d   : > { %5888 = vmatmul.mubr.msk.bf16.gmra.mrb[20].mxu0 %vm685_vm3, %v7669_v24  ;;  %v3983_v24 = vor.u32 %v3982_v18, %v3979_v30  ;;  %v7862_v57 = vsel %vm6672_vm7, %v4439_v51, %v4440_v23  ;;  %v6264_v30 = vld [vmem:[%s6420_s27 + $0x54] sm:$0xff]   ;;  %v5421_v18 = vrot.slane %v5405_v62, 9  ;;  %v4362_v9 = vrot.slane %v4360_v56, 4  ;;  %v6316_v28 = vld [vmem:[%s6420_s27 + $0x2c] sm:$0x1] }
 0x11e   : > { %5736 = vmatmul.mubr.msk.bf16.gmra.mrb[4].mxu1 %vm685_vm3, %v6261_v29  ;;  %5891 = vmatprep.mubr.msk.bf16.mxu0 %vm685_vm3, %v5385_v46  ;;  %v3998_v46 = vrot.slane %v3996_v50, 5  ;;  %v5387_v29 = vcombine.low %v3965_v4, %v3975_v25  ;;  %v5449_v8 = vcombine.low %v7857_v31, %v7862_v57  ;;  %v4447_v63 = vrot.slane %v7580_v48, 5  ;;  %v6314_v50 = vld [vmem:[%s6420_s27 + $0x28] sm:$0xf]  ;;  %v5407_v25 = vld [vmem:[%s6420_s27 + $0x30] sm:$0xe] }
 0x11f   : > { %5739 = vmatprep.mubr.msk.bf16.mxu1 %vm685_vm3, %v6262_v19  ;;  %v3984_v12 = vrot.slane %v3983_v24, 4  ;;  %v4363_v19 = vrot.slane %v6313_v11, 5  ;;  %v4367_v61 = vrot.slane %v6314_v50, 5  ;;  %v7885_v48 = vsel %vm6672_vm7, %v5433_v41, %v4444_v6  ;;  %v6266_v11 = vld [vmem:[%s6420_s27 + $0x6c] sm:$0xff]   ;;  %v8248_v41 = vld [vmem:[#allocation6_spill] sm:$0xff] }
 0x120   : > { %v3999_v34 = vsel %vm6446_vm4, %v3994_v17, %v3998_v46  ;;  %v4446_v24 = vrot.slane %v4444_v6, 4  ;;  %v4361_v43 = vsel %vm6672_vm7, %v5421_v18, %v4360_v56  ;;  %v5422_v51 = vrot.slane %v5406_v2, 9  ;;  %v5419_v50 = vld [vmem:[%s6420_s27 + $0xc0] sm:$0xe]  ;;  %v6330_v31 = vld [vmem:[%s6420_s27 + $0xc8] sm:$0x1] }
 0x121   : > { %v3989_v4 = vsel %vm6446_vm4, %v3984_v12, %v7825_v5  ;;  %v4364_v23 = vsel %vm6672_vm7, %v4362_v9, %v4363_v19  ;;  %v6315_v5 = vld [vmem:[%s6420_s27 + $0x34] sm:$0xf]  ;;  %v6265_v12 = vld [vmem:[%s6420_s27 + $0x60] sm:$0xff]   ;;  %v5423_v18 = vrot.slane %v5407_v25, 9  ;;  %v4454_v9 = vrot.slane %v7694_v35, 5 }
 0x122   : > { %v4374_v16 = vrot.slane %v6315_v5, 5  ;;  %v7896_v62 = vsel %vm6672_vm7, %v4446_v24, %v4447_v63  ;;  %v5388_v46 = vcombine.low %v3989_v4, %v3999_v34  ;;  %v5438_v17 = vcombine.low %v4361_v43, %v4364_v23  ;;  %v5408_v24 = vld [vmem:[%s6420_s27 + $0x3c] sm:$0xe] }
 0x123   : > { %v5450_v56 = vcombine.low %v7885_v48, %v7896_v62  ;;  %v4377_v6 = vrot.slane %v8248_v41, 5  ;;  %v4368_v35 = vsel %vm6672_vm7, %v5422_v51, %v4367_v61  ;;  %v5435_v5 = vrot.slane %v5419_v50, 9 }
 0x124   : > { %v4376_v19 = vrot.slane %v4374_v16, 4  ;;  %v4375_v23 = vsel %vm6672_vm7, %v5423_v18, %v4374_v16  ;;  %v4461_v51 = vrot.slane %v7787_v52, 5  ;;  %v2438_v57 = vshll.u32 %v6330_v31, 16 }
 0x125   : > { %5892 = vmatmul.mubr.msk.bf16.gmra.mrb[24].mxu0 %vm685_vm3, %v5386_v7  ;;  %v5434_v7 = vrot.slane %v5418_v49, 9 }
 0x126   : > { %5740 = vmatmul.mubr.msk.bf16.gmra.mrb[8].mxu1 %vm685_vm3, %v6263_v47  ;;  %5895 = vmatprep.mubr.msk.bf16.mxu0 %vm685_vm3, %v5387_v29  ;;  %v4370_v47 = vrot.slane %v6316_v28, 5  ;;  %v4451_v29 = vrot.slane %v7645_v39, 5  ;;  %v8249_v39 = vld [vmem:[#allocation7_spill] sm:$0xff]  ;;  %v4378_v25 = vsel %vm6672_vm7, %v4376_v19, %v4377_v6  ;;  %v5424_v28 = vrot.slane %v5408_v24, 9 }
 0x127   : > { %5743 = vmatprep.mubr.msk.bf16.mxu1 %vm685_vm3, %v6264_v30  ;;  %v4369_v30 = vrot.slane %v4367_v61, 4  ;;  %v4381_v49 = vrot.slane %v8249_v39, 5  ;;  %v4458_v61 = vrot.slane %v7697_v58, 5  ;;  %v6317_v39 = vld [vmem:[%s6420_s27 + $0x70] sm:$0xf]  ;;  %v4465_v24 = vrot.slane %v7773_v55, 5 }
 0x128   : > { %v7908_v63 = vsel %vm6672_vm7, %v5434_v7, %v4451_v29  ;;  %v4453_v2 = vrot.slane %v4451_v29, 4  ;;  %v5137_v7 = vld [vmem:[%s6420_s27 + $0x6c] sm:$0xf]  ;;  %v8250_v29 = vld [vmem:[#allocation8_spill] sm:$0xff] }
 0x129   : > { %v4371_v34 = vsel %vm6672_vm7, %v4369_v30, %v4370_v47  ;;  %v4383_v47 = vrot.slane %v4381_v49, 4  ;;  %v6267_v30 = vld [vmem:[%s6420_s27 + $0x78] sm:$0xff]   ;;  %v7939_v16 = vsel %vm6672_vm7, %v5435_v5, %v4458_v61  ;;  %v4460_v18 = vrot.slane %v4458_v61, 4 }
 0x12a   : > { %v7915_v4 = vsel %vm6672_vm7, %v4453_v2, %v4454_v9  ;;  %v5440_v9 = vcombine.low %v4375_v23, %v4378_v25  ;;  %v2251_v19 = vshrl.u32 %v5137_v7, 16  ;;  %v2254_v41 = vshll.u32 %v5137_v7, 16 }
 0x12b   : > { %v5451_v43 = vcombine.low %v7908_v63, %v7915_v4  ;;  %v7944_v58 = vsel %vm6672_vm7, %v4460_v18, %v4461_v51  ;;  %v4382_v6 = vsel %vm6672_vm7, %v5424_v28, %v4381_v49  ;;  %v4468_v49 = vrot.slane %v7818_v21, 5  ;;  %v6269_v51 = vld [vmem:[%s6420_s27 + $0x90] sm:$0xff]   ;;  %v6270_v21 = vld [vmem:[%s6420_s27 + $0x9c] sm:$0xff]  }
 0x12c   : > { %v5452_v50 = vcombine.low %v7939_v16, %v7944_v58  ;;  %v2253_v23 = vrot.slane %v2251_v19, 4  ;;  %v2256_v25 = vrot.slane %v2254_v41, 5  ;;  %v4467_v7 = vrot.slane %v4465_v24, 4 }
 0x12d   : > { %5896 = vmatmul.mubr.msk.bf16.gmra.mrb[28].mxu0 %vm685_vm3, %v5388_v46  ;;  %v5439_v46 = vcombine.low %v4368_v35, %v4371_v34  ;;  %v2260_v35 = vshll.u32 %v6317_v39, 16  ;;  %v2264_v34 = vshrl.u32 %v6317_v39, 16 }
 0x12e   : > { %5744 = vmatmul.mubr.msk.bf16.gmra.mrb[12].mxu1 %vm685_vm3, %v6265_v12  ;;  %5901 = vmatprep.mubr.msk.bf16.mxu0 %vm685_vm3, %v5438_v17  ;;  %v4384_v12 = vrot.slane %v8250_v29, 5  ;;  %v5420_v17 = vld [vmem:[%s6420_s27 + $0xcc] sm:$0xe]  ;;  %v7966_v55 = vsel %vm6672_vm7, %v4467_v7, %v4468_v49 }
 0x12f   : > { %5747 = vmatprep.mubr.msk.bf16.mxu1 %vm685_vm3, %v6266_v11  ;;  %v6268_v11 = vld [vmem:[%s6420_s27 + $0x84] sm:$0xff]   ;;  %v5436_v52 = vrot.slane %v5420_v17, 9  ;;  %v2266_v28 = vrot.slane %v2264_v34, 4  ;;  %v6318_v17 = vld [vmem:[%s6420_s27 + $0x74] sm:$0x1] }
 0x130   : > { %v4385_v2 = vsel %vm6672_vm7, %v4383_v47, %v4384_v12  ;;  %v5143_v47 = vld [vmem:[%s6420_s27 + $0x84] sm:$0xf]  ;;  %v2257_v12 = vor.u32 %v2256_v25, %v2253_v23  ;;  %v6272_v34 = vld [vmem:[%s6420_s27 + $0xb4] sm:$0xff]  }
 0x131   : > { %v7961_v5 = vsel %vm6672_vm7, %v5436_v52, %v4465_v24  ;;  %v5441_v61 = vcombine.low %v4382_v6, %v4385_v2  ;;  %v2302_v18 = vshll.u32 %v5143_v47, 16  ;;  %v5146_v6 = vld [vmem:[%s6420_s27 + $0x90] sm:$0xf]  ;;  %v6271_v2 = vld [vmem:[%s6420_s27 + $0xa8] sm:$0xff]  }
 0x132   : > { %v5453_v29 = vcombine.low %v7961_v5, %v7966_v55  ;;  %v2258_v52 = vrot.slane %v2257_v12, 4  ;;  %v2323_v23 = vshrl.u32 %v5146_v6, 16  ;;  %v2326_v25 = vshll.u32 %v5146_v6, 16 }
 0x133   : > { %v2356_v12 = vshll.u32 %v6321_v60, 16 }
 0x134   : > { %v2328_v14 = vrot.slane %v2326_v25, 5  ;;  %v6324_v25 = vld [vmem:[%s6420_s27 + $0xa4] sm:$0x1] }
 0x135   : > { %5902 = vmatmul.mubr.msk.bf16.vlgmr.msra.gmra.mrb[0].mxu0 %vm685_vm3, %v5439_v46  ;;  %v2262_v46 = vrot.slane %v2260_v35, 5  ;;  %v5149_v35 = vld [vmem:[%s6420_s27 + $0x9c] sm:$0xf]  ;;  %v8008_v6 = vrot.slane %v2356_v12, 5 }
 0x136   : > { %5748 = vmatmul.mubr.msk.bf16.gmra.mrb[16].mxu1 %vm685_vm3, %v6267_v30  ;;  %5905 = vmatprep.mubr.msk.bf16.mxu0 %vm685_vm3, %v5440_v9  ;;  %v2270_v30 = vshll.u32 %v6318_v17, 16  ;;  %v2299_v9 = vshrl.u32 %v5143_v47, 16  ;;  %v2350_v47 = vshll.u32 %v5149_v35, 16  ;;  %v6322_v17 = vld [vmem:[%s6420_s27 + $0x8c] sm:$0x1] }
 0x137   : > { %5751 = vmatprep.mubr.msk.bf16.mxu1 %vm685_vm3, %v6268_v11  ;;  %v2267_v13 = vor.u32 %v2266_v28, %v2262_v46  ;;  %v6319_v11 = vld [vmem:[%s6420_s27 + $0x88] sm:$0xf]  ;;  %v2263_v7 = vsel %vm6446_vm4, %v2258_v52, %v2262_v46 }
 0x138   : > { %v2308_v19 = vshll.u32 %v6319_v11, 16  ;;  %v2312_v41 = vshrl.u32 %v6319_v11, 16  ;;  %v2272_v0 = vrot.slane %v2270_v30, 5  ;;  %v2301_v36 = vrot.slane %v2299_v9, 4 }
 0x139   : > { %v2268_v39 = vrot.slane %v2267_v13, 4  ;;  %v2318_v30 = vshll.u32 %v6322_v17, 16  ;;  %v2325_v9 = vrot.slane %v2323_v23, 4  ;;  %v2352_v11 = vrot.slane %v2350_v47, 5 }
 0x13a   : > { %v7985_v24 = vrot.slane %v2308_v19, 5  ;;  %v2314_v49 = vrot.slane %v2312_v41, 4  ;;  %v6273_v19 = vld [vmem:[%s6420_s27 + $0xc0] sm:$0xff]  }
 0x13b   : > { %v2273_v46 = vsel %vm6446_vm4, %v2268_v39, %v2272_v0  ;;  %v5152_v39 = vld [vmem:[%s6420_s27 + $0xa8] sm:$0xf] }
 0x13c   : > { %v2315_v13 = vor.u32 %v2314_v49, %v7985_v24  ;;  %v5170_v41 = vcombine.low %v2263_v7, %v2273_v46  ;;  %v2366_v7 = vshll.u32 %v6324_v25, 16  ;;  %v2374_v45 = vshll.u32 %v5152_v39, 16 }
 0x13d   : > { %5906 = vmatmul.mubr.msk.bf16.gmra.mrb[4].mxu0 %vm685_vm3, %v5441_v61  ;;  %v6320_v61 = vld [vmem:[%s6420_s27 + $0x94] sm:$0xf] }
 0x13e   : > { %5752 = vmatmul.mubr.msk.bf16.gmra.mrb[20].mxu1 %vm685_vm3, %v6269_v51  ;;  %5909 = vmatprep.mubr.msk.bf16.mxu0 %vm685_vm3, %v5442_v10  ;;  %v2304_v10 = vrot.slane %v2302_v18, 5  ;;  %v2332_v51 = vshll.u32 %v6320_v61, 16  ;;  %v2336_v28 = vshrl.u32 %v6320_v61, 16  ;;  %v2316_v0 = vrot.slane %v2315_v13, 4 }
 0x13f   : > { %5755 = vmatprep.mubr.msk.bf16.mxu1 %vm685_vm3, %v6270_v21  ;;  %v2347_v21 = vshrl.u32 %v5149_v35, 16  ;;  %v6323_v35 = vld [vmem:[%s6420_s27 + $0x98] sm:$0x1]  ;;  %v2371_v61 = vshrl.u32 %v5152_v39, 16  ;;  %v5158_v39 = vld [vmem:[%s6420_s27 + $0xc0] sm:$0xf] }
 0x140   : > { %v2305_v15 = vor.u32 %v2304_v10, %v2301_v36  ;;  %v8005_v26 = vrot.slane %v2332_v51, 5  ;;  %v2320_v36 = vrot.slane %v2318_v30, 5  ;;  %v2329_v10 = vor.u32 %v2328_v14, %v2325_v9  ;;  %v5155_v51 = vld [vmem:[%s6420_s27 + $0xb4] sm:$0xf] }
 0x141   : > { %v2349_v18 = vrot.slane %v2347_v21, 4  ;;  %v2384_v21 = vshrl.u32 %v6325_v27, 16  ;;  %v2395_v20 = vshrl.u32 %v5155_v51, 16  ;;  %v2398_v42 = vshll.u32 %v5155_v51, 16 }
 0x142   : > { %v2306_v52 = vrot.slane %v2305_v15, 4  ;;  %v2321_v46 = vsel %vm6446_vm4, %v2316_v0, %v2320_v36  ;;  %v2330_v15 = vrot.slane %v2329_v10, 4  ;;  %v2368_v30 = vrot.slane %v2366_v7, 5 }
 0x143   : > { %v2353_v23 = vor.u32 %v2352_v11, %v2349_v18  ;;  %v2373_v9 = vrot.slane %v2371_v61, 4  ;;  %v2386_v11 = vrot.slane %v2384_v21, 4  ;;  %v6329_v61 = vld [vmem:[%s6420_s27 + $0xbc] sm:$0x1] }
 0x144   : > { %v2311_v47 = vsel %vm6446_vm4, %v2306_v52, %v7985_v24  ;;  %v2335_v0 = vsel %vm6446_vm4, %v2330_v15, %v8005_v26  ;;  %v2414_v22 = vshll.u32 %v6329_v61, 16 }
 0x145   : > { %5910 = vmatmul.mubr.msk.bf16.gmra.mrb[8].mxu0 %vm685_vm3, %v5443_v40  ;;  %v2360_v40 = vshrl.u32 %v6321_v60, 16  ;;  %v2354_v17 = vrot.slane %v2353_v23, 4  ;;  %v5172_v24 = vcombine.low %v2311_v47, %v2321_v46 }
 0x146   : > { %5756 = vmatmul.mubr.msk.bf16.gmra.mrb[24].mxu1 %vm685_vm3, %v6271_v2  ;;  %5913 = vmatprep.mubr.msk.bf16.mxu0 %vm685_vm3, %v5444_v54  ;;  %v2338_v54 = vrot.slane %v2336_v28, 4 }
 0x147   : > { %5759 = vmatprep.mubr.msk.bf16.mxu1 %vm685_vm3, %v6272_v34  ;;  %v2362_v2 = vrot.slane %v2360_v40, 4  ;;  %v2342_v34 = vshll.u32 %v6323_v35, 16  ;;  %v2359_v10 = vsel %vm6446_vm4, %v2354_v17, %v8008_v6  ;;  %v2440_v17 = vrot.slane %v2438_v57, 5 }
 0x148   : > { %v2339_v49 = vor.u32 %v2338_v54, %v8005_v26  ;;  %v2376_v54 = vrot.slane %v2374_v45, 5  ;;  %v6327_v26 = vld [vmem:[%s6420_s27 + $0xb0] sm:$0x1] }
 0x149   : > { %v2363_v28 = vor.u32 %v2362_v2, %v8008_v6  ;;  %v2344_v60 = vrot.slane %v2342_v34, 5  ;;  %v2390_v35 = vshll.u32 %v6327_v26, 16  ;;  %v2419_v34 = vshrl.u32 %v5158_v39, 16 }
 0x14a   : > { %v2340_v13 = vrot.slane %v2339_v49, 4  ;;  %v2377_v38 = vor.u32 %v2376_v54, %v2373_v9  ;;  %v2422_v6 = vshll.u32 %v5158_v39, 16  ;;  %v6328_v49 = vld [vmem:[%s6420_s27 + $0xc4] sm:$0xf] }
 0x14b   : > { %v2364_v14 = vrot.slane %v2363_v28, 4  ;;  %v2428_v23 = vshll.u32 %v6328_v49, 16  ;;  %v2432_v25 = vshrl.u32 %v6328_v49, 16  ;;  %v2392_v45 = vrot.slane %v2390_v35, 5 }
 0x14c   : > { %v2345_v36 = vsel %vm6446_vm4, %v2340_v13, %v2344_v60  ;;  %v2378_v51 = vrot.slane %v2377_v38, 4  ;;  %v2416_v60 = vrot.slane %v2414_v22, 5 }
 0x14d   : > { %5914 = vmatmul.mubr.msk.bf16.gmra.mrb[12].mxu0 %vm685_vm3, %v5445_v53  ;;  %v2380_v53 = vshll.u32 %v6325_v27, 16  ;;  %v2369_v59 = vsel %vm6446_vm4, %v2364_v14, %v2368_v30  ;;  %v5173_v44 = vcombine.low %v2335_v0, %v2345_v36  ;;  %v2421_v27 = vrot.slane %v2419_v34, 4 }
 0x14e   : > { %5760 = vmatmul.mubr.msk.bf16.gmra.mrb[28].mxu1 %vm685_vm3, %v6273_v19  ;;  %5917 = vmatprep.mubr.msk.bf16.mxu0 %vm685_vm3, %v5446_v33  ;;  %v6326_v33 = vld [vmem:[%s6420_s27 + $0xb8] sm:$0xf]  ;;  %v2397_v19 = vrot.slane %v2395_v20, 4  ;;  %v2430_v21 = vrot.slane %v2428_v23, 5  ;;  %v2434_v47 = vrot.slane %v2432_v25, 4 }
 0x14f   : > { %5781 = vmatprep.mubr.msk.bf16.mxu1 %vm685_vm3, %v5170_v41  ;;  %v2404_v12 = vshll.u32 %v6326_v33, 16  ;;  %v2408_v40 = vshrl.u32 %v6326_v33, 16  ;;  %v2382_v18 = vrot.slane %v2380_v53, 5  ;;  %v2400_v41 = vrot.slane %v2398_v42, 5 }
 0x150   : > { %v2424_v53 = vrot.slane %v2422_v6, 5 }
 0x151   : > { %v2406_v52 = vrot.slane %v2404_v12, 5  ;;  %v2410_v2 = vrot.slane %v2408_v40, 4  ;;  %v2383_v20 = vsel %vm6446_vm4, %v2378_v51, %v2382_v18  ;;  %v2435_v12 = vor.u32 %v2434_v47, %v2430_v21 }
 0x152   : > { %v2425_v33 = vor.u32 %v2424_v53, %v2421_v27 }
 0x153   : > { %v2411_v7 = vor.u32 %v2410_v2, %v2406_v52  ;;  %v2436_v13 = vrot.slane %v2435_v12, 4  ;;  %v8100_v2 = vld [vmem:[%s8182_s2] ss:$0 sm:$0xff] }
 0x154   : > { %v2426_v40 = vrot.slane %v2425_v33, 4 }
 0x155   : > { %5918 = vmatmul.mubr.msk.bf16.gmra.mrb[16].mxu0 %vm685_vm3, %v5447_v37  ;;  %v2387_v37 = vor.u32 %v2386_v11, %v2382_v18  ;;  %v2412_v15 = vrot.slane %v2411_v7, 4  ;;  %v2441_v9 = vsel %vm6446_vm4, %v2436_v13, %v2440_v17 }
 0x156   : > { %5782 = vmatmul.mubr.msk.bf16.vlgmr.msra.gmra.mrb[16].mxu1 %vm685_vm3, %v7814_v1  ;;  %5921 = vmatprep.mubr.msk.bf16.mxu0 %vm685_vm3, %v5448_v3  ;;  %v2401_v1 = vor.u32 %v2400_v41, %v2397_v19  ;;  %v5174_v3 = vcombine.low %v2359_v10, %v2369_v59  ;;  %v2431_v30 = vsel %vm6446_vm4, %v2426_v40, %v2430_v21 }
 0x157   : > { %5785 = vmatprep.mubr.msk.bf16.mxu1 %vm685_vm3, %v5172_v24  ;;  %v2388_v28 = vrot.slane %v2387_v37, 4  ;;  %v2417_v48 = vsel %vm6446_vm4, %v2412_v15, %v2416_v60  ;;  %v5177_v14 = vcombine.low %v2431_v30, %v2441_v9 }
 0x158   : > { %v2402_v46 = vrot.slane %v2401_v1, 4 }
 0x159   : > { %v2393_v42 = vsel %vm6446_vm4, %v2388_v28, %v2392_v45 }
 0x15a   : > { %v5175_v62 = vcombine.low %v2383_v20, %v2393_v42 }
 0x15d   : > { %5922 = vmatmul.mubr.msk.bf16.gmra.mrb[20].mxu0 %vm685_vm3, %v5449_v8  ;;  %v2407_v8 = vsel %vm6446_vm4, %v2402_v46, %v2406_v52 }
 0x15e   : > { %5786 = vmatmul.mubr.msk.bf16.gmra.mrb[20].mxu1 %vm685_vm3, %v5173_v44  ;;  %5925 = vmatprep.mubr.msk.bf16.mxu0 %vm685_vm3, %v5450_v56  ;;  %v5176_v56 = vcombine.low %v2407_v8, %v2417_v48 }
 0x15f   : > { %5789 = vmatprep.mubr.msk.bf16.mxu1 %vm685_vm3, %v5174_v3 }
 0x165   : > { %5926 = vmatmul.mubr.msk.bf16.gmra.mrb[24].mxu0 %vm685_vm3, %v5451_v43 }
 0x166   : > { %5790 = vmatmul.mubr.msk.bf16.gmra.mrb[24].mxu1 %vm685_vm3, %v5175_v62  ;;  %5929 = vmatprep.mubr.msk.bf16.mxu0 %vm685_vm3, %v5452_v50 }
 0x167   : > { %5793 = vmatprep.mubr.msk.bf16.mxu1 %vm685_vm3, %v5176_v56 }
 0x16d   : > { %5930 = vmatmul.mubr.msk.bf16.gmra.mrb[28].mxu0 %vm685_vm3, %v5453_v29 }
 0x16e   : > { %5794 = vmatmul.mubr.msk.bf16.gmra.mrb[28].mxu1 %vm685_vm3, %v5177_v14 }
 0x1e9   : > { %v5733_v63 = vpop.f32.mrb[0].mxu1 }
 0x1ea   : > { %v1851_v4 = vpop.f32.mrb[1].mxu1 }
 0x1eb   : > { %v5734_v43 = vpop.f32.mrb[2].mxu1 }
 0x1ec   : > { %v1854_v16 = vpop.f32.mrb[3].mxu1 }
 0x1f1   : > { %v5737_v58 = vpop.f32.mrb[4].mxu1 }
 0x1f2   : > { %v1867_v50 = vpop.f32.mrb[5].mxu1 }
 0x1f3   : > { %v5738_v54 = vpop.f32.mrb[6].mxu1 }
 0x1f4   : > { %v1870_v18 = vpop.f32.mrb[7].mxu1 }
 0x1f9   : > { %v5741_v11 = vpop.f32.mrb[8].mxu1 }
 0x1fa   : > { %v1883_v32 = vpop.f32.mrb[9].mxu1 }
 0x1fb   : > { %v5742_v24 = vpop.f32.mrb[10].mxu1 }
 0x1fc   : > { %v1886_v19 = vpop.f32.mrb[11].mxu1 }
 0x201   : > { %v5745_v41 = vpop.f32.mrb[12].mxu1 }
 0x202   : > { %v1899_v52 = vpop.f32.mrb[13].mxu1 }
 0x203   : > { %v5746_v5 = vpop.f32.mrb[14].mxu1 }
 0x204   : > { %v1902_v55 = vpop.f32.mrb[15].mxu1 }
 0x208   : > { %v5903_v29 = vpop.f32.mrb[0].mxu0 }
 0x209   : > { %v5935_v39 = vadd.f32 %v5903_v29, %v5733_v63  ;;  %v4605_v0 = vpop.f32.mrb[1].mxu0 }
 0x20a   : > { %v5936_v36 = vadd.f32 %v4605_v0, %v1851_v4  ;;  %v5904_v10 = vpop.f32.mrb[2].mxu0 }
 0x20b   : > { %v4773_v59 = vadd.f32 %v5935_v39, %v8100_v2  ;;  %v5937_v38 = vadd.f32 %v5904_v10, %v5734_v43  ;;  %v4608_v37 = vpop.f32.mrb[3].mxu0 }
 0x20c   : > { %v4771_v26 = vadd.f32 %v5936_v36, %v8100_v2  ;;  %v5938_v35 = vadd.f32 %v4608_v37, %v1854_v16 }
 0x20d   : > { %4805 = vst [vmem:[%s8105_s24 + $0x10] sm:$0xff] %v4773_v59  ;;  %v4774_v34 = vadd.f32 %v5937_v38, %v8100_v2 }
 0x20e   : > { %4803 = vst [vmem:[%s8105_s24] sm:$0xff] %v4771_v26  ;;  %v4772_v6 = vadd.f32 %v5938_v35, %v8100_v2 }
 0x20f   : > { %4806 = vst [vmem:[%s8105_s24 + $0x18] sm:$0xff] %v4774_v34 }
 0x210   : > { %4804 = vst [vmem:[%s8105_s24 + $0x8] sm:$0xff] %v4772_v6  ;;  %v5907_v49 = vpop.f32.mrb[4].mxu0 }
 0x211   : > { %v5939_v23 = vadd.f32 %v5907_v49, %v5737_v58  ;;  %v4621_v25 = vpop.f32.mrb[5].mxu0 }
 0x212   : > { %v5940_v1 = vadd.f32 %v4621_v25, %v1867_v50  ;;  %v5908_v7 = vpop.f32.mrb[6].mxu0 }
 0x213   : > { %v4777_v61 = vadd.f32 %v5939_v23, %v8100_v2  ;;  %v5941_v22 = vadd.f32 %v5908_v7, %v5738_v54  ;;  %v4624_v44 = vpop.f32.mrb[7].mxu0 }
 0x214   : > { %v4775_v3 = vadd.f32 %v5940_v1, %v8100_v2  ;;  %v5942_v51 = vadd.f32 %v4624_v44, %v1870_v18 }
 0x215   : > { %4809 = vst [vmem:[%s8105_s24 + $0x30] sm:$0xff] %v4777_v61  ;;  %v4778_v28 = vadd.f32 %v5941_v22, %v8100_v2 }
 0x216   : > { %4807 = vst [vmem:[%s8105_s24 + $0x20] sm:$0xff] %v4775_v3  ;;  %v4776_v45 = vadd.f32 %v5942_v51, %v8100_v2 }
 0x217   : > { %4810 = vst [vmem:[%s8105_s24 + $0x38] sm:$0xff] %v4778_v28 }
 0x218   : > { %4808 = vst [vmem:[%s8105_s24 + $0x28] sm:$0xff] %v4776_v45  ;;  %v5911_v27 = vpop.f32.mrb[8].mxu0 }
 0x219   : > { %v5943_v53 = vadd.f32 %v5911_v27, %v5741_v11  ;;  %v4637_v21 = vpop.f32.mrb[9].mxu0 }
 0x21a   : > { %v5944_v47 = vadd.f32 %v4637_v21, %v1883_v32  ;;  %v5912_v46 = vpop.f32.mrb[10].mxu0 }
 0x21b   : > { %v4781_v15 = vadd.f32 %v5943_v53, %v8100_v2  ;;  %v5945_v60 = vadd.f32 %v5912_v46, %v5742_v24  ;;  %v4640_v20 = vpop.f32.mrb[11].mxu0 }
 0x21c   : > { %v4779_v42 = vadd.f32 %v5944_v47, %v8100_v2  ;;  %v5946_v33 = vadd.f32 %v4640_v20, %v1886_v19 }
 0x21d   : > { %4813 = vst [vmem:[%s8105_s24 + $0x50] sm:$0xff] %v4781_v15  ;;  %v4782_v12 = vadd.f32 %v5945_v60, %v8100_v2 }
 0x21e   : > { %4811 = vst [vmem:[%s8105_s24 + $0x40] sm:$0xff] %v4779_v42  ;;  %v4780_v31 = vadd.f32 %v5946_v33, %v8100_v2 }
 0x21f   : > { %4814 = vst [vmem:[%s8105_s24 + $0x58] sm:$0xff] %v4782_v12 }
 0x220   : > { %4812 = vst [vmem:[%s8105_s24 + $0x48] sm:$0xff] %v4780_v31  ;;  %v5915_v57 = vpop.f32.mrb[12].mxu0 }
 0x221   : > { %v5947_v8 = vadd.f32 %v5915_v57, %v5745_v41  ;;  %v4653_v48 = vpop.f32.mrb[13].mxu0 }
 0x222   : > { %v5948_v62 = vadd.f32 %v4653_v48, %v1899_v52  ;;  %v5916_v56 = vpop.f32.mrb[14].mxu0 }
 0x223   : > { %v4785_v40 = vadd.f32 %v5947_v8, %v8100_v2  ;;  %v5949_v13 = vadd.f32 %v5916_v56, %v5746_v5  ;;  %v4656_v17 = vpop.f32.mrb[15].mxu0 }
 0x224   : > { %v4783_v30 = vadd.f32 %v5948_v62, %v8100_v2  ;;  %v5950_v9 = vadd.f32 %v4656_v17, %v1902_v55 }
 0x225   : > { %4817 = vst [vmem:[%s8105_s24 + $0x70] sm:$0xff] %v4785_v40  ;;  %v4786_v14 = vadd.f32 %v5949_v13, %v8100_v2 }
 0x226   : > { %4815 = vst [vmem:[%s8105_s24 + $0x60] sm:$0xff] %v4783_v30  ;;  %v4784_v63 = vadd.f32 %v5950_v9, %v8100_v2 }
 0x227   : > { %4818 = vst [vmem:[%s8105_s24 + $0x78] sm:$0xff] %v4786_v14 }
 0x228   : > { %4816 = vst [vmem:[%s8105_s24 + $0x68] sm:$0xff] %v4784_v63  ;;  %v5919_v4 = vpop.f32.mrb[16].mxu0 }
 0x229   : > { %v5783_v43 = vpop.f32.mrb[16].mxu1  ;;  %v4669_v16 = vpop.f32.mrb[17].mxu0 }
 0x22a   : > { %v5951_v58 = vadd.f32 %v5919_v4, %v5783_v43  ;;  %v2641_v50 = vpop.f32.mrb[17].mxu1  ;;  %v5920_v54 = vpop.f32.mrb[18].mxu0 }
 0x22b   : > { %v5952_v18 = vadd.f32 %v4669_v16, %v2641_v50  ;;  %v5784_v11 = vpop.f32.mrb[18].mxu1  ;;  %v4672_v32 = vpop.f32.mrb[19].mxu0 }
 0x22c   : > { %v4789_v24 = vadd.f32 %v5951_v58, %v8100_v2  ;;  %v5953_v19 = vadd.f32 %v5920_v54, %v5784_v11  ;;  %v2644_v41 = vpop.f32.mrb[19].mxu1 }
 0x22d   : > { %v4787_v52 = vadd.f32 %v5952_v18, %v8100_v2  ;;  %v5954_v5 = vadd.f32 %v4672_v32, %v2644_v41 }
 0x22e   : > { %4821 = vst [vmem:[%s8105_s24 + $0x90] sm:$0xff] %v4789_v24  ;;  %v4790_v55 = vadd.f32 %v5953_v19, %v8100_v2 }
 0x22f   : > { %4819 = vst [vmem:[%s8105_s24 + $0x80] sm:$0xff] %v4787_v52  ;;  %v4788_v29 = vadd.f32 %v5954_v5, %v8100_v2 }
 0x230   : > { %4822 = vst [vmem:[%s8105_s24 + $0x98] sm:$0xff] %v4790_v55  ;;  %v5923_v39 = vpop.f32.mrb[20].mxu0 }
 0x231   : > { %4820 = vst [vmem:[%s8105_s24 + $0x88] sm:$0xff] %v4788_v29  ;;  %v5787_v0 = vpop.f32.mrb[20].mxu1  ;;  %v4685_v36 = vpop.f32.mrb[21].mxu0 }
 0x232   : > { %v5955_v10 = vadd.f32 %v5923_v39, %v5787_v0  ;;  %v2657_v59 = vpop.f32.mrb[21].mxu1  ;;  %v5924_v38 = vpop.f32.mrb[22].mxu0 }
 0x233   : > { %v5956_v37 = vadd.f32 %v4685_v36, %v2657_v59  ;;  %v5788_v26 = vpop.f32.mrb[22].mxu1  ;;  %v4688_v35 = vpop.f32.mrb[23].mxu0 }
 0x234   : > { %v4793_v34 = vadd.f32 %v5955_v10, %v8100_v2  ;;  %v5957_v6 = vadd.f32 %v5924_v38, %v5788_v26  ;;  %v2660_v49 = vpop.f32.mrb[23].mxu1 }
 0x235   : > { %v4791_v23 = vadd.f32 %v5956_v37, %v8100_v2  ;;  %v5958_v25 = vadd.f32 %v4688_v35, %v2660_v49 }
 0x236   : > { %4825 = vst [vmem:[%s8105_s24 + $0xb0] sm:$0xff] %v4793_v34  ;;  %v4794_v1 = vadd.f32 %v5957_v6, %v8100_v2 }
 0x237   : > { %4823 = vst [vmem:[%s8105_s24 + $0xa0] sm:$0xff] %v4791_v23  ;;  %v4792_v7 = vadd.f32 %v5958_v25, %v8100_v2 }
 0x238   : > { %4826 = vst [vmem:[%s8105_s24 + $0xb8] sm:$0xff] %v4794_v1  ;;  %v5927_v61 = vpop.f32.mrb[24].mxu0 }
 0x239   : > { %4824 = vst [vmem:[%s8105_s24 + $0xa8] sm:$0xff] %v4792_v7  ;;  %v5791_v22 = vpop.f32.mrb[24].mxu1  ;;  %v4701_v44 = vpop.f32.mrb[25].mxu0 }
 0x23a   : > { %v5959_v3 = vadd.f32 %v5927_v61, %v5791_v22  ;;  %v2673_v51 = vpop.f32.mrb[25].mxu1  ;;  %v5928_v28 = vpop.f32.mrb[26].mxu0 }
 0x23b   : > { %v5960_v45 = vadd.f32 %v4701_v44, %v2673_v51  ;;  %v5792_v27 = vpop.f32.mrb[26].mxu1  ;;  %v4704_v53 = vpop.f32.mrb[27].mxu0 }
 0x23c   : > { %v4797_v21 = vadd.f32 %v5959_v3, %v8100_v2  ;;  %v5961_v47 = vadd.f32 %v5928_v28, %v5792_v27  ;;  %v2676_v46 = vpop.f32.mrb[27].mxu1 }
 0x23d   : > { %v4795_v15 = vadd.f32 %v5960_v45, %v8100_v2  ;;  %v5962_v60 = vadd.f32 %v4704_v53, %v2676_v46 }
 0x23e   : > { %4829 = vst [vmem:[%s8105_s24 + $0xd0] sm:$0xff] %v4797_v21  ;;  %v4798_v20 = vadd.f32 %v5961_v47, %v8100_v2 }
 0x23f   : > { %4827 = vst [vmem:[%s8105_s24 + $0xc0] sm:$0xff] %v4795_v15  ;;  %v4796_v42 = vadd.f32 %v5962_v60, %v8100_v2 }
 0x240   : > { %4830 = vst [vmem:[%s8105_s24 + $0xd8] sm:$0xff] %v4798_v20  ;;  %v5931_v33 = vpop.f32.mrb[28].mxu0 }
 0x241   : > { %4828 = vst [vmem:[%s8105_s24 + $0xc8] sm:$0xff] %v4796_v42  ;;  %v5795_v12 = vpop.f32.mrb[28].mxu1  ;;  %v4717_v31 = vpop.f32.mrb[29].mxu0 }
 0x242   : > { %v5963_v57 = vadd.f32 %v5931_v33, %v5795_v12  ;;  %v2689_v8 = vpop.f32.mrb[29].mxu1  ;;  %v5932_v48 = vpop.f32.mrb[30].mxu0 }
 0x243   : > { %v5964_v62 = vadd.f32 %v4717_v31, %v2689_v8  ;;  %v5796_v56 = vpop.f32.mrb[30].mxu1  ;;  %v4720_v40 = vpop.f32.mrb[31].mxu0 }
 0x244   : > { %v4801_v13 = vadd.f32 %v5963_v57, %v8100_v2  ;;  %v5965_v17 = vadd.f32 %v5932_v48, %v5796_v56  ;;  %v2692_v30 = vpop.f32.mrb[31].mxu1 }
 0x245   : > { %v4799_v9 = vadd.f32 %v5964_v62, %v8100_v2  ;;  %v5966_v14 = vadd.f32 %v4720_v40, %v2692_v30 }
 0x246   : > { %4833 = vst [vmem:[%s8105_s24 + $0xf0] sm:$0xff] %v4801_v13  ;;  %v4802_v63 = vadd.f32 %v5965_v17, %v8100_v2 }
 0x247   : > { %4831 = vst [vmem:[%s8105_s24 + $0xe0] sm:$0xff] %v4799_v9  ;;  %v4800_v4 = vadd.f32 %v5966_v14, %v8100_v2 }
 0x248   : > { %4834 = vst [vmem:[%s8105_s24 + $0xf8] sm:$0xff] %v4802_v63 }
 0x249   : > { %4832 = vst [vmem:[%s8105_s24 + $0xe8] sm:$0xff] %v4800_v4 }
 0x24a PF: > { %s13_s14 = sadd.s32 1, %s6353_s14   ;;  %s8251_s12 = smov %s6349_s13 }
 0x24b   : > { %p10_p5 = scmp.ge.s32.totalorder %s13_s14, 4   ;;  %s8252_s13 = smov %s8254_s15 }
 0x24d   :  { %12 = sbr.rel (!%p10_p5) target bundleno = 2 (0x2), region = 73 }

</bundles_post_ra>
